<compile_context>
chip_gen: v7x
topology: tpu7x:2x2x1
jax: 0.10.0
libtpu: 0.0.40
codegen_flags: <defaults>
</compile_context>

<pallas_src>
import jax
import jax.numpy as jnp
from jax import lax
from jax.experimental import pallas as pl
from jax.experimental.pallas import tpu as pltpu


def _lstm_fc_kernel(x_ref, h0_ref, c0_ref,
                    w0_ref, b0_ref, w1_ref, b1_ref,
                    wfc_ref, bfc_ref,
                    fc_ref, hn_ref, cn_ref):
    """Single invocation: runs the full 2-layer LSTM recurrence over T timesteps
    in-kernel, then applies the FC + sigmoid head once on the final hidden state.

    x_ref:   [T, B, E]  time-major embeddings (fully VMEM-resident)
    h0/c0:   [L, B, H]  initial states (aliased with hn/cn outputs)
    w0/w1:   [(in+H), 4H]  fused [W_ih; W_hh] per layer, b*: [1, 4H]
    wfc/bfc: [H, O] / [1, O]
    fc_ref:  [B, O]  sigmoid(fc(h_last)) for the last timestep only
    hn/cn:   [L, B, H]
    """
    T = x_ref.shape[0]
    H = hn_ref.shape[-1]

    # Hoist weight/bias loads out of the recurrence.
    w0 = w0_ref[...]
    b0 = b0_ref[...]
    w1 = w1_ref[...]
    b1 = b1_ref[...]

    def cell(xh, c, w, b):
        # PyTorch gate order: i, f, g, o.  Single fused [x, h] @ [W_ih; W_hh] matmul.
        gates = jnp.dot(xh, w, preferred_element_type=jnp.float32) + b
        i = jax.nn.sigmoid(gates[:, 0 * H:1 * H])
        f = jax.nn.sigmoid(gates[:, 1 * H:2 * H])
        g = jnp.tanh(gates[:, 2 * H:3 * H])
        o = jax.nn.sigmoid(gates[:, 3 * H:4 * H])
        c_new = f * c + i * g
        h_new = o * jnp.tanh(c_new)
        return h_new, c_new

    def step(t, carry):
        h0, c0, h1, c1 = carry
        x_t = x_ref[t]                                   # [B, E], dynamic time index
        # TODO(synk): LSTM inter-layer dropout and nn.Dropout(0.2) are inference no-ops.
        h0, c0 = cell(jnp.concatenate([x_t, h0], axis=-1), c0, w0, b0)
        h1, c1 = cell(jnp.concatenate([h0, h1], axis=-1), c1, w1, b1)
        return h0, c0, h1, c1

    carry0 = (h0_ref[0], c0_ref[0], h0_ref[1], c0_ref[1])
    # T is static and small here; unroll for LLO scheduling visibility.
    h0f, c0f, h1f, c1f = lax.fori_loop(0, T, step, carry0, unroll=True)

    hn_ref[0] = h0f
    cn_ref[0] = c0f
    hn_ref[1] = h1f
    cn_ref[1] = c1f

    # FC + sigmoid head exactly once, on the final timestep's top-layer output.
    # TODO(synk): for scaled-up models cast matmul operands to bf16 on v6e/v7x
    # (keep f32 accumulation); kept f32 here for bitwise-tight verification.
    fc_ref[...] = jax.nn.sigmoid(
        jnp.dot(h1f, wfc_ref[...], preferred_element_type=jnp.float32)
        + bfc_ref[...])


def sentiment_forward(x_tokens, hidden, params):
    """Mirrors SentimentNet.forward.  Returns (out[B], (h_n, c_n))."""
    emb_table = params["embedding"]
    h0, c0 = hidden
    L, B, H = h0.shape
    T = x_tokens.shape[1]
    O = params["w_fc"].shape[1]

    # Embedding lookup (glue, plain JAX gather).
    embeds = jnp.take(emb_table, x_tokens, axis=0)       # [B, T, E]
    embeds_t = jnp.transpose(embeds, (1, 0, 2))          # [T, B, E]  time-major

    # Pad batch to a sublane multiple (8): padded rows compute garbage that is
    # sliced away below; initial padded state is zero so everything stays finite.
    Bp = ((B + 7) // 8) * 8
    pad = Bp - B
    if pad:
        embeds_t = jnp.pad(embeds_t, ((0, 0), (0, pad), (0, 0)))
        h0p = jnp.pad(h0, ((0, 0), (0, pad), (0, 0)))
        c0p = jnp.pad(c0, ((0, 0), (0, pad), (0, 0)))
    else:
        h0p, c0p = h0, c0

    # Fuse per-cell input/recurrent weights into one [(in+H), 4H] matrix per layer.
    w_cat0 = jnp.concatenate([params["w_ih0"], params["w_hh0"]], axis=0)
    w_cat1 = jnp.concatenate([params["w_ih1"], params["w_hh1"]], axis=0)

    fc_last, hn, cn = pl.pallas_call(
        _lstm_fc_kernel,
        out_shape=(
            jax.ShapeDtypeStruct((Bp, O), jnp.float32),     # sigmoid(fc(h_T)) once
            jax.ShapeDtypeStruct((L, Bp, H), jnp.float32),  # h_n
            jax.ShapeDtypeStruct((L, Bp, H), jnp.float32),  # c_n
        ),
        # h0 -> h_n, c0 -> c_n: no init copy, no redundant HBM buffers.
        input_output_aliases={1: 1, 2: 2},
    )(embeds_t, h0p, c0p,
      w_cat0, params["b0"], w_cat1, params["b1"],
      params["w_fc"], params["b_fc"])

    # Match: sigmoid(fc(lstm_out)).view(B, -1)[:, -1]
    # == last output unit of the last timestep (the only FC the kernel computes).
    out = fc_last[:B, -1]
    return out, (hn[:, :B], cn[:, :B])


def reference_forward(x_tokens, hidden, params):
    """Pure-JAX reference (same math, no Pallas, unfused) for verification."""
    emb = jnp.take(params["embedding"], x_tokens, axis=0)   # [B, T, E]
    h, c = hidden
    B, T, _ = emb.shape
    H = h.shape[-1]
    hs = [h[0], h[1]]
    cs = [c[0], c[1]]
    fc_outs = []

    def cell(x, hh, cc, wih, whh, b):
        gates = x @ wih + hh @ whh + b
        i = jax.nn.sigmoid(gates[:, 0 * H:1 * H])
        f = jax.nn.sigmoid(gates[:, 1 * H:2 * H])
        g = jnp.tanh(gates[:, 2 * H:3 * H])
        o = jax.nn.sigmoid(gates[:, 3 * H:4 * H])
        cn = f * cc + i * g
        hn = o * jnp.tanh(cn)
        return hn, cn

    for t in range(T):
        x_t = emb[:, t, :]
        hs[0], cs[0] = cell(x_t, hs[0], cs[0],
                            params["w_ih0"], params["w_hh0"], params["b0"])
        hs[1], cs[1] = cell(hs[0], hs[1], cs[1],
                            params["w_ih1"], params["w_hh1"], params["b1"])
        fc_outs.append(jax.nn.sigmoid(hs[1] @ params["w_fc"] + params["b_fc"]))

    fc_out = jnp.stack(fc_outs, axis=1)                     # [B, T, O]
    out = fc_out.reshape(B, -1)[:, -1]
    hn = jnp.stack(hs, axis=0)
    cn = jnp.stack(cs, axis=0)
    return out, (hn, cn)


def init_params(key, vocab_size, output_size, embedding_dim, hidden_dim):
    """Deterministic synthetic parameters (PyTorch-style shapes, pre-transposed)."""
    ks = jax.random.split(key, 10)
    k = 1.0 / jnp.sqrt(hidden_dim)

    def uni(kk, shape):
        return jax.random.uniform(kk, shape, jnp.float32, -k, k)

    return {
        "embedding": jax.random.normal(ks[0], (vocab_size, embedding_dim), jnp.float32),
        # layer 0: W_ih^T [E,4H], W_hh^T [H,4H], combined bias (b_ih + b_hh) [1,4H]
        "w_ih0": uni(ks[1], (embedding_dim, 4 * hidden_dim)),
        "w_hh0": uni(ks[2], (hidden_dim, 4 * hidden_dim)),
        "b0": uni(ks[3], (1, 4 * hidden_dim)),
        # layer 1: W_ih^T [H,4H], W_hh^T [H,4H], bias [1,4H]
        "w_ih1": uni(ks[4], (hidden_dim, 4 * hidden_dim)),
        "w_hh1": uni(ks[5], (hidden_dim, 4 * hidden_dim)),
        "b1": uni(ks[6], (1, 4 * hidden_dim)),
        # fc: W^T [H,O], bias [1,O]
        "w_fc": uni(ks[7], (hidden_dim, output_size)),
        "b_fc": uni(ks[8], (1, output_size)),
    }


if __name__ == "__main__":
    vocab_size, output_size = 50, 1
    embedding_dim, hidden_dim, n_layers = 32, 32, 2
    B, T = 4, 8

    key = jax.random.PRNGKey(0)
    kp, kx = jax.random.split(key)
    params = init_params(kp, vocab_size, output_size, embedding_dim, hidden_dim)

    x = jax.random.randint(kx, (B, T), 0, vocab_size, dtype=jnp.int32)
    hidden = (jnp.zeros((n_layers, B, hidden_dim), jnp.float32),   # init_hidden()
              jnp.zeros((n_layers, B, hidden_dim), jnp.float32))

    fwd = jax.jit(sentiment_forward)
    out, (hn, cn) = fwd(x, hidden, params)
    jax.block_until_ready(out)

    ref_out, (ref_hn, ref_cn) = reference_forward(x, hidden, params)
    assert out.shape == (B,)
    assert hn.shape == (n_layers, B, hidden_dim)
    assert jnp.allclose(out, ref_out, atol=1e-4), (out, ref_out)
    assert jnp.allclose(hn, ref_hn, atol=1e-4)
    assert jnp.allclose(cn, ref_cn, atol=1e-4)

    print("KERNEL_OK")
</pallas_src>

<mosaic_0001>
module attributes {stable_mosaic.version = 11 : i64} {
  func.func @_lstm_fc_kernel(%arg0: memref<8x8x32xf32, #tpu.memory_space<vmem>>, %arg1: memref<2x8x32xf32, #tpu.memory_space<vmem>>, %arg2: memref<2x8x32xf32, #tpu.memory_space<vmem>>, %arg3: memref<64x128xf32, #tpu.memory_space<vmem>>, %arg4: memref<1x128xf32, #tpu.memory_space<vmem>>, %arg5: memref<64x128xf32, #tpu.memory_space<vmem>>, %arg6: memref<1x128xf32, #tpu.memory_space<vmem>>, %arg7: memref<32x1xf32, #tpu.memory_space<vmem>>, %arg8: memref<1x1xf32, #tpu.memory_space<vmem>>, %arg9: memref<8x1xf32, #tpu.memory_space<vmem>>, %arg10: memref<2x8x32xf32, #tpu.memory_space<vmem>>, %arg11: memref<2x8x32xf32, #tpu.memory_space<vmem>>) attributes {dimension_semantics = [], scalar_prefetch = 0 : i64, scratch_operands = 0 : i64, tpu.core_type = #tpu.core_type<tc>} {
    %c0 = arith.constant 0 : index
    %c0_0 = arith.constant 0 : index
    %0 = vector.load %arg3[%c0, %c0_0] : memref<64x128xf32, #tpu.memory_space<vmem>>, vector<64x128xf32>
    %c0_1 = arith.constant 0 : index
    %c0_2 = arith.constant 0 : index
    %1 = vector.load %arg4[%c0_1, %c0_2] : memref<1x128xf32, #tpu.memory_space<vmem>>, vector<1x128xf32>
    %c0_3 = arith.constant 0 : index
    %c0_4 = arith.constant 0 : index
    %2 = vector.load %arg5[%c0_3, %c0_4] : memref<64x128xf32, #tpu.memory_space<vmem>>, vector<64x128xf32>
    %c0_5 = arith.constant 0 : index
    %c0_6 = arith.constant 0 : index
    %3 = vector.load %arg6[%c0_5, %c0_6] : memref<1x128xf32, #tpu.memory_space<vmem>>, vector<1x128xf32>
    %c0_7 = arith.constant 0 : index
    %c0_8 = arith.constant 0 : index
    %c0_9 = arith.constant 0 : index
    %4 = vector.load %arg1[%c0_7, %c0_8, %c0_9] : memref<2x8x32xf32, #tpu.memory_space<vmem>>, vector<1x8x32xf32>
    %5 = vector.shape_cast %4 : vector<1x8x32xf32> to vector<8x32xf32>
    %c0_10 = arith.constant 0 : index
    %c0_11 = arith.constant 0 : index
    %c0_12 = arith.constant 0 : index
    %6 = vector.load %arg2[%c0_10, %c0_11, %c0_12] : memref<2x8x32xf32, #tpu.memory_space<vmem>>, vector<1x8x32xf32>
    %7 = vector.shape_cast %6 : vector<1x8x32xf32> to vector<8x32xf32>
    %c1 = arith.constant 1 : index
    %c0_13 = arith.constant 0 : index
    %c0_14 = arith.constant 0 : index
    %8 = vector.load %arg1[%c1, %c0_13, %c0_14] : memref<2x8x32xf32, #tpu.memory_space<vmem>>, vector<1x8x32xf32>
    %9 = vector.shape_cast %8 : vector<1x8x32xf32> to vector<8x32xf32>
    %c1_15 = arith.constant 1 : index
    %c0_16 = arith.constant 0 : index
    %c0_17 = arith.constant 0 : index
    %10 = vector.load %arg2[%c1_15, %c0_16, %c0_17] : memref<2x8x32xf32, #tpu.memory_space<vmem>>, vector<1x8x32xf32>
    %11 = vector.shape_cast %10 : vector<1x8x32xf32> to vector<8x32xf32>
    %c0_i32 = arith.constant 0 : i32
    %12 = arith.index_cast %c0_i32 : i32 to index
    %c0_18 = arith.constant 0 : index
    %c0_19 = arith.constant 0 : index
    %13 = vector.load %arg0[%12, %c0_18, %c0_19] : memref<8x8x32xf32, #tpu.memory_space<vmem>>, vector<1x8x32xf32>
    %14 = vector.shape_cast %13 : vector<1x8x32xf32> to vector<8x32xf32>
    %15 = tpu.concatenate %14, %5 in 1 : vector<8x32xf32>, vector<8x32xf32> -> vector<8x64xf32>
    %cst = arith.constant dense<0.000000e+00> : vector<8x128xf32>
    %16 = tpu.matmul %15, %0, %cst {dimension_numbers = #tpu.dot_dimension_numbers<[1], [0], [0], [1], [0, 0, 1, 1], [], []>} : vector<8x64xf32>, vector<64x128xf32>, vector<8x128xf32> -> vector<8x128xf32>
    %17 = vector.broadcast %1 : vector<1x128xf32> to vector<8x128xf32>
    %18 = arith.addf %16, %17 : vector<8x128xf32>
    %19 = vector.extract_strided_slice %18 {offsets = [0, 0], sizes = [8, 32], strides = [1, 1]} : vector<8x128xf32> to vector<8x32xf32>
    %20 = arith.negf %19 : vector<8x32xf32>
    %21 = math.exp %20 : vector<8x32xf32>
    %cst_20 = arith.constant 1.000000e+00 : f32
    %22 = vector.broadcast %cst_20 : f32 to vector<8x32xf32>
    %23 = arith.addf %22, %21 : vector<8x32xf32>
    %24 = arith.divf %22, %23 : vector<8x32xf32>
    %25 = vector.extract_strided_slice %18 {offsets = [0, 32], sizes = [8, 32], strides = [1, 1]} : vector<8x128xf32> to vector<8x32xf32>
    %26 = arith.negf %25 : vector<8x32xf32>
    %27 = math.exp %26 : vector<8x32xf32>
    %cst_21 = arith.constant 1.000000e+00 : f32
    %28 = vector.broadcast %cst_21 : f32 to vector<8x32xf32>
    %29 = arith.addf %28, %27 : vector<8x32xf32>
    %30 = arith.divf %28, %29 : vector<8x32xf32>
    %31 = vector.extract_strided_slice %18 {offsets = [0, 64], sizes = [8, 32], strides = [1, 1]} : vector<8x128xf32> to vector<8x32xf32>
    %32 = math.tanh %31 : vector<8x32xf32>
    %33 = vector.extract_strided_slice %18 {offsets = [0, 96], sizes = [8, 32], strides = [1, 1]} : vector<8x128xf32> to vector<8x32xf32>
    %34 = arith.negf %33 : vector<8x32xf32>
    %35 = math.exp %34 : vector<8x32xf32>
    %cst_22 = arith.constant 1.000000e+00 : f32
    %36 = vector.broadcast %cst_22 : f32 to vector<8x32xf32>
    %37 = arith.addf %36, %35 : vector<8x32xf32>
    %38 = arith.divf %36, %37 : vector<8x32xf32>
    %39 = arith.mulf %30, %7 : vector<8x32xf32>
    %40 = arith.mulf %24, %32 : vector<8x32xf32>
    %41 = arith.addf %39, %40 : vector<8x32xf32>
    %42 = math.tanh %41 : vector<8x32xf32>
    %43 = arith.mulf %38, %42 : vector<8x32xf32>
    %44 = tpu.concatenate %43, %9 in 1 : vector<8x32xf32>, vector<8x32xf32> -> vector<8x64xf32>
    %cst_23 = arith.constant dense<0.000000e+00> : vector<8x128xf32>
    %45 = tpu.matmul %44, %2, %cst_23 {dimension_numbers = #tpu.dot_dimension_numbers<[1], [0], [0], [1], [0, 0, 1, 1], [], []>} : vector<8x64xf32>, vector<64x128xf32>, vector<8x128xf32> -> vector<8x128xf32>
    %46 = vector.broadcast %3 : vector<1x128xf32> to vector<8x128xf32>
    %47 = arith.addf %45, %46 : vector<8x128xf32>
    %48 = vector.extract_strided_slice %47 {offsets = [0, 0], sizes = [8, 32], strides = [1, 1]} : vector<8x128xf32> to vector<8x32xf32>
    %49 = arith.negf %48 : vector<8x32xf32>
    %50 = math.exp %49 : vector<8x32xf32>
    %cst_24 = arith.constant 1.000000e+00 : f32
    %51 = vector.broadcast %cst_24 : f32 to vector<8x32xf32>
    %52 = arith.addf %51, %50 : vector<8x32xf32>
    %53 = arith.divf %51, %52 : vector<8x32xf32>
    %54 = vector.extract_strided_slice %47 {offsets = [0, 32], sizes = [8, 32], strides = [1, 1]} : vector<8x128xf32> to vector<8x32xf32>
    %55 = arith.negf %54 : vector<8x32xf32>
    %56 = math.exp %55 : vector<8x32xf32>
    %cst_25 = arith.constant 1.000000e+00 : f32
    %57 = vector.broadcast %cst_25 : f32 to vector<8x32xf32>
    %58 = arith.addf %57, %56 : vector<8x32xf32>
    %59 = arith.divf %57, %58 : vector<8x32xf32>
    %60 = vector.extract_strided_slice %47 {offsets = [0, 64], sizes = [8, 32], strides = [1, 1]} : vector<8x128xf32> to vector<8x32xf32>
    %61 = math.tanh %60 : vector<8x32xf32>
    %62 = vector.extract_strided_slice %47 {offsets = [0, 96], sizes = [8, 32], strides = [1, 1]} : vector<8x128xf32> to vector<8x32xf32>
    %63 = arith.negf %62 : vector<8x32xf32>
    %64 = math.exp %63 : vector<8x32xf32>
    %cst_26 = arith.constant 1.000000e+00 : f32
    %65 = vector.broadcast %cst_26 : f32 to vector<8x32xf32>
    %66 = arith.addf %65, %64 : vector<8x32xf32>
    %67 = arith.divf %65, %66 : vector<8x32xf32>
    %68 = arith.mulf %59, %11 : vector<8x32xf32>
    %69 = arith.mulf %53, %61 : vector<8x32xf32>
    %70 = arith.addf %68, %69 : vector<8x32xf32>
    %71 = math.tanh %70 : vector<8x32xf32>
    %72 = arith.mulf %67, %71 : vector<8x32xf32>
    %c1_i32 = arith.constant 1 : i32
    %73 = arith.index_cast %c1_i32 : i32 to index
    %c0_27 = arith.constant 0 : index
    %c0_28 = arith.constant 0 : index
    %74 = vector.load %arg0[%73, %c0_27, %c0_28] : memref<8x8x32xf32, #tpu.memory_space<vmem>>, vector<1x8x32xf32>
    %75 = vector.shape_cast %74 : vector<1x8x32xf32> to vector<8x32xf32>
    %76 = tpu.concatenate %75, %43 in 1 : vector<8x32xf32>, vector<8x32xf32> -> vector<8x64xf32>
    %cst_29 = arith.constant dense<0.000000e+00> : vector<8x128xf32>
    %77 = tpu.matmul %76, %0, %cst_29 {dimension_numbers = #tpu.dot_dimension_numbers<[1], [0], [0], [1], [0, 0, 1, 1], [], []>} : vector<8x64xf32>, vector<64x128xf32>, vector<8x128xf32> -> vector<8x128xf32>
    %78 = vector.broadcast %1 : vector<1x128xf32> to vector<8x128xf32>
    %79 = arith.addf %77, %78 : vector<8x128xf32>
    %80 = vector.extract_strided_slice %79 {offsets = [0, 0], sizes = [8, 32], strides = [1, 1]} : vector<8x128xf32> to vector<8x32xf32>
    %81 = arith.negf %80 : vector<8x32xf32>
    %82 = math.exp %81 : vector<8x32xf32>
    %cst_30 = arith.constant 1.000000e+00 : f32
    %83 = vector.broadcast %cst_30 : f32 to vector<8x32xf32>
    %84 = arith.addf %83, %82 : vector<8x32xf32>
    %85 = arith.divf %83, %84 : vector<8x32xf32>
    %86 = vector.extract_strided_slice %79 {offsets = [0, 32], sizes = [8, 32], strides = [1, 1]} : vector<8x128xf32> to vector<8x32xf32>
    %87 = arith.negf %86 : vector<8x32xf32>
    %88 = math.exp %87 : vector<8x32xf32>
    %cst_31 = arith.constant 1.000000e+00 : f32
    %89 = vector.broadcast %cst_31 : f32 to vector<8x32xf32>
    %90 = arith.addf %89, %88 : vector<8x32xf32>
    %91 = arith.divf %89, %90 : vector<8x32xf32>
    %92 = vector.extract_strided_slice %79 {offsets = [0, 64], sizes = [8, 32], strides = [1, 1]} : vector<8x128xf32> to vector<8x32xf32>
    %93 = math.tanh %92 : vector<8x32xf32>
    %94 = vector.extract_strided_slice %79 {offsets = [0, 96], sizes = [8, 32], strides = [1, 1]} : vector<8x128xf32> to vector<8x32xf32>
    %95 = arith.negf %94 : vector<8x32xf32>
    %96 = math.exp %95 : vector<8x32xf32>
    %cst_32 = arith.constant 1.000000e+00 : f32
    %97 = vector.broadcast %cst_32 : f32 to vector<8x32xf32>
    %98 = arith.addf %97, %96 : vector<8x32xf32>
    %99 = arith.divf %97, %98 : vector<8x32xf32>
    %100 = arith.mulf %91, %41 : vector<8x32xf32>
    %101 = arith.mulf %85, %93 : vector<8x32xf32>
    %102 = arith.addf %100, %101 : vector<8x32xf32>
    %103 = math.tanh %102 : vector<8x32xf32>
    %104 = arith.mulf %99, %103 : vector<8x32xf32>
    %105 = tpu.concatenate %104, %72 in 1 : vector<8x32xf32>, vector<8x32xf32> -> vector<8x64xf32>
    %cst_33 = arith.constant dense<0.000000e+00> : vector<8x128xf32>
    %106 = tpu.matmul %105, %2, %cst_33 {dimension_numbers = #tpu.dot_dimension_numbers<[1], [0], [0], [1], [0, 0, 1, 1], [], []>} : vector<8x64xf32>, vector<64x128xf32>, vector<8x128xf32> -> vector<8x128xf32>
    %107 = vector.broadcast %3 : vector<1x128xf32> to vector<8x128xf32>
    %108 = arith.addf %106, %107 : vector<8x128xf32>
    %109 = vector.extract_strided_slice %108 {offsets = [0, 0], sizes = [8, 32], strides = [1, 1]} : vector<8x128xf32> to vector<8x32xf32>
    %110 = arith.negf %109 : vector<8x32xf32>
    %111 = math.exp %110 : vector<8x32xf32>
    %cst_34 = arith.constant 1.000000e+00 : f32
    %112 = vector.broadcast %cst_34 : f32 to vector<8x32xf32>
    %113 = arith.addf %112, %111 : vector<8x32xf32>
    %114 = arith.divf %112, %113 : vector<8x32xf32>
    %115 = vector.extract_strided_slice %108 {offsets = [0, 32], sizes = [8, 32], strides = [1, 1]} : vector<8x128xf32> to vector<8x32xf32>
    %116 = arith.negf %115 : vector<8x32xf32>
    %117 = math.exp %116 : vector<8x32xf32>
    %cst_35 = arith.constant 1.000000e+00 : f32
    %118 = vector.broadcast %cst_35 : f32 to vector<8x32xf32>
    %119 = arith.addf %118, %117 : vector<8x32xf32>
    %120 = arith.divf %118, %119 : vector<8x32xf32>
    %121 = vector.extract_strided_slice %108 {offsets = [0, 64], sizes = [8, 32], strides = [1, 1]} : vector<8x128xf32> to vector<8x32xf32>
    %122 = math.tanh %121 : vector<8x32xf32>
    %123 = vector.extract_strided_slice %108 {offsets = [0, 96], sizes = [8, 32], strides = [1, 1]} : vector<8x128xf32> to vector<8x32xf32>
    %124 = arith.negf %123 : vector<8x32xf32>
    %125 = math.exp %124 : vector<8x32xf32>
    %cst_36 = arith.constant 1.000000e+00 : f32
    %126 = vector.broadcast %cst_36 : f32 to vector<8x32xf32>
    %127 = arith.addf %126, %125 : vector<8x32xf32>
    %128 = arith.divf %126, %127 : vector<8x32xf32>
    %129 = arith.mulf %120, %70 : vector<8x32xf32>
    %130 = arith.mulf %114, %122 : vector<8x32xf32>
    %131 = arith.addf %129, %130 : vector<8x32xf32>
    %132 = math.tanh %131 : vector<8x32xf32>
    %133 = arith.mulf %128, %132 : vector<8x32xf32>
    %c2_i32 = arith.constant 2 : i32
    %134 = arith.index_cast %c2_i32 : i32 to index
    %c0_37 = arith.constant 0 : index
    %c0_38 = arith.constant 0 : index
    %135 = vector.load %arg0[%134, %c0_37, %c0_38] : memref<8x8x32xf32, #tpu.memory_space<vmem>>, vector<1x8x32xf32>
    %136 = vector.shape_cast %135 : vector<1x8x32xf32> to vector<8x32xf32>
    %137 = tpu.concatenate %136, %104 in 1 : vector<8x32xf32>, vector<8x32xf32> -> vector<8x64xf32>
    %cst_39 = arith.constant dense<0.000000e+00> : vector<8x128xf32>
    %138 = tpu.matmul %137, %0, %cst_39 {dimension_numbers = #tpu.dot_dimension_numbers<[1], [0], [0], [1], [0, 0, 1, 1], [], []>} : vector<8x64xf32>, vector<64x128xf32>, vector<8x128xf32> -> vector<8x128xf32>
    %139 = vector.broadcast %1 : vector<1x128xf32> to vector<8x128xf32>
    %140 = arith.addf %138, %139 : vector<8x128xf32>
    %141 = vector.extract_strided_slice %140 {offsets = [0, 0], sizes = [8, 32], strides = [1, 1]} : vector<8x128xf32> to vector<8x32xf32>
    %142 = arith.negf %141 : vector<8x32xf32>
    %143 = math.exp %142 : vector<8x32xf32>
    %cst_40 = arith.constant 1.000000e+00 : f32
    %144 = vector.broadcast %cst_40 : f32 to vector<8x32xf32>
    %145 = arith.addf %144, %143 : vector<8x32xf32>
    %146 = arith.divf %144, %145 : vector<8x32xf32>
    %147 = vector.extract_strided_slice %140 {offsets = [0, 32], sizes = [8, 32], strides = [1, 1]} : vector<8x128xf32> to vector<8x32xf32>
    %148 = arith.negf %147 : vector<8x32xf32>
    %149 = math.exp %148 : vector<8x32xf32>
    %cst_41 = arith.constant 1.000000e+00 : f32
    %150 = vector.broadcast %cst_41 : f32 to vector<8x32xf32>
    %151 = arith.addf %150, %149 : vector<8x32xf32>
    %152 = arith.divf %150, %151 : vector<8x32xf32>
    %153 = vector.extract_strided_slice %140 {offsets = [0, 64], sizes = [8, 32], strides = [1, 1]} : vector<8x128xf32> to vector<8x32xf32>
    %154 = math.tanh %153 : vector<8x32xf32>
    %155 = vector.extract_strided_slice %140 {offsets = [0, 96], sizes = [8, 32], strides = [1, 1]} : vector<8x128xf32> to vector<8x32xf32>
    %156 = arith.negf %155 : vector<8x32xf32>
    %157 = math.exp %156 : vector<8x32xf32>
    %cst_42 = arith.constant 1.000000e+00 : f32
    %158 = vector.broadcast %cst_42 : f32 to vector<8x32xf32>
    %159 = arith.addf %158, %157 : vector<8x32xf32>
    %160 = arith.divf %158, %159 : vector<8x32xf32>
    %161 = arith.mulf %152, %102 : vector<8x32xf32>
    %162 = arith.mulf %146, %154 : vector<8x32xf32>
    %163 = arith.addf %161, %162 : vector<8x32xf32>
    %164 = math.tanh %163 : vector<8x32xf32>
    %165 = arith.mulf %160, %164 : vector<8x32xf32>
    %166 = tpu.concatenate %165, %133 in 1 : vector<8x32xf32>, vector<8x32xf32> -> vector<8x64xf32>
    %cst_43 = arith.constant dense<0.000000e+00> : vector<8x128xf32>
    %167 = tpu.matmul %166, %2, %cst_43 {dimension_numbers = #tpu.dot_dimension_numbers<[1], [0], [0], [1], [0, 0, 1, 1], [], []>} : vector<8x64xf32>, vector<64x128xf32>, vector<8x128xf32> -> vector<8x128xf32>
    %168 = vector.broadcast %3 : vector<1x128xf32> to vector<8x128xf32>
    %169 = arith.addf %167, %168 : vector<8x128xf32>
    %170 = vector.extract_strided_slice %169 {offsets = [0, 0], sizes = [8, 32], strides = [1, 1]} : vector<8x128xf32> to vector<8x32xf32>
    %171 = arith.negf %170 : vector<8x32xf32>
    %172 = math.exp %171 : vector<8x32xf32>
    %cst_44 = arith.constant 1.000000e+00 : f32
    %173 = vector.broadcast %cst_44 : f32 to vector<8x32xf32>
    %174 = arith.addf %173, %172 : vector<8x32xf32>
    %175 = arith.divf %173, %174 : vector<8x32xf32>
    %176 = vector.extract_strided_slice %169 {offsets = [0, 32], sizes = [8, 32], strides = [1, 1]} : vector<8x128xf32> to vector<8x32xf32>
    %177 = arith.negf %176 : vector<8x32xf32>
    %178 = math.exp %177 : vector<8x32xf32>
    %cst_45 = arith.constant 1.000000e+00 : f32
    %179 = vector.broadcast %cst_45 : f32 to vector<8x32xf32>
    %180 = arith.addf %179, %178 : vector<8x32xf32>
    %181 = arith.divf %179, %180 : vector<8x32xf32>
    %182 = vector.extract_strided_slice %169 {offsets = [0, 64], sizes = [8, 32], strides = [1, 1]} : vector<8x128xf32> to vector<8x32xf32>
    %183 = math.tanh %182 : vector<8x32xf32>
    %184 = vector.extract_strided_slice %169 {offsets = [0, 96], sizes = [8, 32], strides = [1, 1]} : vector<8x128xf32> to vector<8x32xf32>
    %185 = arith.negf %184 : vector<8x32xf32>
    %186 = math.exp %185 : vector<8x32xf32>
    %cst_46 = arith.constant 1.000000e+00 : f32
    %187 = vector.broadcast %cst_46 : f32 to vector<8x32xf32>
    %188 = arith.addf %187, %186 : vector<8x32xf32>
    %189 = arith.divf %187, %188 : vector<8x32xf32>
    %190 = arith.mulf %181, %131 : vector<8x32xf32>
    %191 = arith.mulf %175, %183 : vector<8x32xf32>
    %192 = arith.addf %190, %191 : vector<8x32xf32>
    %193 = math.tanh %192 : vector<8x32xf32>
    %194 = arith.mulf %189, %193 : vector<8x32xf32>
    %c3_i32 = arith.constant 3 : i32
    %195 = arith.index_cast %c3_i32 : i32 to index
    %c0_47 = arith.constant 0 : index
    %c0_48 = arith.constant 0 : index
    %196 = vector.load %arg0[%195, %c0_47, %c0_48] : memref<8x8x32xf32, #tpu.memory_space<vmem>>, vector<1x8x32xf32>
    %197 = vector.shape_cast %196 : vector<1x8x32xf32> to vector<8x32xf32>
    %198 = tpu.concatenate %197, %165 in 1 : vector<8x32xf32>, vector<8x32xf32> -> vector<8x64xf32>
    %cst_49 = arith.constant dense<0.000000e+00> : vector<8x128xf32>
    %199 = tpu.matmul %198, %0, %cst_49 {dimension_numbers = #tpu.dot_dimension_numbers<[1], [0], [0], [1], [0, 0, 1, 1], [], []>} : vector<8x64xf32>, vector<64x128xf32>, vector<8x128xf32> -> vector<8x128xf32>
    %200 = vector.broadcast %1 : vector<1x128xf32> to vector<8x128xf32>
    %201 = arith.addf %199, %200 : vector<8x128xf32>
    %202 = vector.extract_strided_slice %201 {offsets = [0, 0], sizes = [8, 32], strides = [1, 1]} : vector<8x128xf32> to vector<8x32xf32>
    %203 = arith.negf %202 : vector<8x32xf32>
    %204 = math.exp %203 : vector<8x32xf32>
    %cst_50 = arith.constant 1.000000e+00 : f32
    %205 = vector.broadcast %cst_50 : f32 to vector<8x32xf32>
    %206 = arith.addf %205, %204 : vector<8x32xf32>
    %207 = arith.divf %205, %206 : vector<8x32xf32>
    %208 = vector.extract_strided_slice %201 {offsets = [0, 32], sizes = [8, 32], strides = [1, 1]} : vector<8x128xf32> to vector<8x32xf32>
    %209 = arith.negf %208 : vector<8x32xf32>
    %210 = math.exp %209 : vector<8x32xf32>
    %cst_51 = arith.constant 1.000000e+00 : f32
    %211 = vector.broadcast %cst_51 : f32 to vector<8x32xf32>
    %212 = arith.addf %211, %210 : vector<8x32xf32>
    %213 = arith.divf %211, %212 : vector<8x32xf32>
    %214 = vector.extract_strided_slice %201 {offsets = [0, 64], sizes = [8, 32], strides = [1, 1]} : vector<8x128xf32> to vector<8x32xf32>
    %215 = math.tanh %214 : vector<8x32xf32>
    %216 = vector.extract_strided_slice %201 {offsets = [0, 96], sizes = [8, 32], strides = [1, 1]} : vector<8x128xf32> to vector<8x32xf32>
    %217 = arith.negf %216 : vector<8x32xf32>
    %218 = math.exp %217 : vector<8x32xf32>
    %cst_52 = arith.constant 1.000000e+00 : f32
    %219 = vector.broadcast %cst_52 : f32 to vector<8x32xf32>
    %220 = arith.addf %219, %218 : vector<8x32xf32>
    %221 = arith.divf %219, %220 : vector<8x32xf32>
    %222 = arith.mulf %213, %163 : vector<8x32xf32>
    %223 = arith.mulf %207, %215 : vector<8x32xf32>
    %224 = arith.addf %222, %223 : vector<8x32xf32>
    %225 = math.tanh %224 : vector<8x32xf32>
    %226 = arith.mulf %221, %225 : vector<8x32xf32>
    %227 = tpu.concatenate %226, %194 in 1 : vector<8x32xf32>, vector<8x32xf32> -> vector<8x64xf32>
    %cst_53 = arith.constant dense<0.000000e+00> : vector<8x128xf32>
    %228 = tpu.matmul %227, %2, %cst_53 {dimension_numbers = #tpu.dot_dimension_numbers<[1], [0], [0], [1], [0, 0, 1, 1], [], []>} : vector<8x64xf32>, vector<64x128xf32>, vector<8x128xf32> -> vector<8x128xf32>
    %229 = vector.broadcast %3 : vector<1x128xf32> to vector<8x128xf32>
    %230 = arith.addf %228, %229 : vector<8x128xf32>
    %231 = vector.extract_strided_slice %230 {offsets = [0, 0], sizes = [8, 32], strides = [1, 1]} : vector<8x128xf32> to vector<8x32xf32>
    %232 = arith.negf %231 : vector<8x32xf32>
    %233 = math.exp %232 : vector<8x32xf32>
    %cst_54 = arith.constant 1.000000e+00 : f32
    %234 = vector.broadcast %cst_54 : f32 to vector<8x32xf32>
    %235 = arith.addf %234, %233 : vector<8x32xf32>
    %236 = arith.divf %234, %235 : vector<8x32xf32>
    %237 = vector.extract_strided_slice %230 {offsets = [0, 32], sizes = [8, 32], strides = [1, 1]} : vector<8x128xf32> to vector<8x32xf32>
    %238 = arith.negf %237 : vector<8x32xf32>
    %239 = math.exp %238 : vector<8x32xf32>
    %cst_55 = arith.constant 1.000000e+00 : f32
    %240 = vector.broadcast %cst_55 : f32 to vector<8x32xf32>
    %241 = arith.addf %240, %239 : vector<8x32xf32>
    %242 = arith.divf %240, %241 : vector<8x32xf32>
    %243 = vector.extract_strided_slice %230 {offsets = [0, 64], sizes = [8, 32], strides = [1, 1]} : vector<8x128xf32> to vector<8x32xf32>
    %244 = math.tanh %243 : vector<8x32xf32>
    %245 = vector.extract_strided_slice %230 {offsets = [0, 96], sizes = [8, 32], strides = [1, 1]} : vector<8x128xf32> to vector<8x32xf32>
    %246 = arith.negf %245 : vector<8x32xf32>
    %247 = math.exp %246 : vector<8x32xf32>
    %cst_56 = arith.constant 1.000000e+00 : f32
    %248 = vector.broadcast %cst_56 : f32 to vector<8x32xf32>
    %249 = arith.addf %248, %247 : vector<8x32xf32>
    %250 = arith.divf %248, %249 : vector<8x32xf32>
    %251 = arith.mulf %242, %192 : vector<8x32xf32>
    %252 = arith.mulf %236, %244 : vector<8x32xf32>
    %253 = arith.addf %251, %252 : vector<8x32xf32>
    %254 = math.tanh %253 : vector<8x32xf32>
    %255 = arith.mulf %250, %254 : vector<8x32xf32>
    %c4_i32 = arith.constant 4 : i32
    %256 = arith.index_cast %c4_i32 : i32 to index
    %c0_57 = arith.constant 0 : index
    %c0_58 = arith.constant 0 : index
    %257 = vector.load %arg0[%256, %c0_57, %c0_58] : memref<8x8x32xf32, #tpu.memory_space<vmem>>, vector<1x8x32xf32>
    %258 = vector.shape_cast %257 : vector<1x8x32xf32> to vector<8x32xf32>
    %259 = tpu.concatenate %258, %226 in 1 : vector<8x32xf32>, vector<8x32xf32> -> vector<8x64xf32>
    %cst_59 = arith.constant dense<0.000000e+00> : vector<8x128xf32>
    %260 = tpu.matmul %259, %0, %cst_59 {dimension_numbers = #tpu.dot_dimension_numbers<[1], [0], [0], [1], [0, 0, 1, 1], [], []>} : vector<8x64xf32>, vector<64x128xf32>, vector<8x128xf32> -> vector<8x128xf32>
    %261 = vector.broadcast %1 : vector<1x128xf32> to vector<8x128xf32>
    %262 = arith.addf %260, %261 : vector<8x128xf32>
    %263 = vector.extract_strided_slice %262 {offsets = [0, 0], sizes = [8, 32], strides = [1, 1]} : vector<8x128xf32> to vector<8x32xf32>
    %264 = arith.negf %263 : vector<8x32xf32>
    %265 = math.exp %264 : vector<8x32xf32>
    %cst_60 = arith.constant 1.000000e+00 : f32
    %266 = vector.broadcast %cst_60 : f32 to vector<8x32xf32>
    %267 = arith.addf %266, %265 : vector<8x32xf32>
    %268 = arith.divf %266, %267 : vector<8x32xf32>
    %269 = vector.extract_strided_slice %262 {offsets = [0, 32], sizes = [8, 32], strides = [1, 1]} : vector<8x128xf32> to vector<8x32xf32>
    %270 = arith.negf %269 : vector<8x32xf32>
    %271 = math.exp %270 : vector<8x32xf32>
    %cst_61 = arith.constant 1.000000e+00 : f32
    %272 = vector.broadcast %cst_61 : f32 to vector<8x32xf32>
    %273 = arith.addf %272, %271 : vector<8x32xf32>
    %274 = arith.divf %272, %273 : vector<8x32xf32>
    %275 = vector.extract_strided_slice %262 {offsets = [0, 64], sizes = [8, 32], strides = [1, 1]} : vector<8x128xf32> to vector<8x32xf32>
    %276 = math.tanh %275 : vector<8x32xf32>
    %277 = vector.extract_strided_slice %262 {offsets = [0, 96], sizes = [8, 32], strides = [1, 1]} : vector<8x128xf32> to vector<8x32xf32>
    %278 = arith.negf %277 : vector<8x32xf32>
    %279 = math.exp %278 : vector<8x32xf32>
    %cst_62 = arith.constant 1.000000e+00 : f32
    %280 = vector.broadcast %cst_62 : f32 to vector<8x32xf32>
    %281 = arith.addf %280, %279 : vector<8x32xf32>
    %282 = arith.divf %280, %281 : vector<8x32xf32>
    %283 = arith.mulf %274, %224 : vector<8x32xf32>
    %284 = arith.mulf %268, %276 : vector<8x32xf32>
    %285 = arith.addf %283, %284 : vector<8x32xf32>
    %286 = math.tanh %285 : vector<8x32xf32>
    %287 = arith.mulf %282, %286 : vector<8x32xf32>
    %288 = tpu.concatenate %287, %255 in 1 : vector<8x32xf32>, vector<8x32xf32> -> vector<8x64xf32>
    %cst_63 = arith.constant dense<0.000000e+00> : vector<8x128xf32>
    %289 = tpu.matmul %288, %2, %cst_63 {dimension_numbers = #tpu.dot_dimension_numbers<[1], [0], [0], [1], [0, 0, 1, 1], [], []>} : vector<8x64xf32>, vector<64x128xf32>, vector<8x128xf32> -> vector<8x128xf32>
    %290 = vector.broadcast %3 : vector<1x128xf32> to vector<8x128xf32>
    %291 = arith.addf %289, %290 : vector<8x128xf32>
    %292 = vector.extract_strided_slice %291 {offsets = [0, 0], sizes = [8, 32], strides = [1, 1]} : vector<8x128xf32> to vector<8x32xf32>
    %293 = arith.negf %292 : vector<8x32xf32>
    %294 = math.exp %293 : vector<8x32xf32>
    %cst_64 = arith.constant 1.000000e+00 : f32
    %295 = vector.broadcast %cst_64 : f32 to vector<8x32xf32>
    %296 = arith.addf %295, %294 : vector<8x32xf32>
    %297 = arith.divf %295, %296 : vector<8x32xf32>
    %298 = vector.extract_strided_slice %291 {offsets = [0, 32], sizes = [8, 32], strides = [1, 1]} : vector<8x128xf32> to vector<8x32xf32>
    %299 = arith.negf %298 : vector<8x32xf32>
    %300 = math.exp %299 : vector<8x32xf32>
    %cst_65 = arith.constant 1.000000e+00 : f32
    %301 = vector.broadcast %cst_65 : f32 to vector<8x32xf32>
    %302 = arith.addf %301, %300 : vector<8x32xf32>
    %303 = arith.divf %301, %302 : vector<8x32xf32>
    %304 = vector.extract_strided_slice %291 {offsets = [0, 64], sizes = [8, 32], strides = [1, 1]} : vector<8x128xf32> to vector<8x32xf32>
    %305 = math.tanh %304 : vector<8x32xf32>
    %306 = vector.extract_strided_slice %291 {offsets = [0, 96], sizes = [8, 32], strides = [1, 1]} : vector<8x128xf32> to vector<8x32xf32>
    %307 = arith.negf %306 : vector<8x32xf32>
    %308 = math.exp %307 : vector<8x32xf32>
    %cst_66 = arith.constant 1.000000e+00 : f32
    %309 = vector.broadcast %cst_66 : f32 to vector<8x32xf32>
    %310 = arith.addf %309, %308 : vector<8x32xf32>
    %311 = arith.divf %309, %310 : vector<8x32xf32>
    %312 = arith.mulf %303, %253 : vector<8x32xf32>
    %313 = arith.mulf %297, %305 : vector<8x32xf32>
    %314 = arith.addf %312, %313 : vector<8x32xf32>
    %315 = math.tanh %314 : vector<8x32xf32>
    %316 = arith.mulf %311, %315 : vector<8x32xf32>
    %c5_i32 = arith.constant 5 : i32
    %317 = arith.index_cast %c5_i32 : i32 to index
    %c0_67 = arith.constant 0 : index
    %c0_68 = arith.constant 0 : index
    %318 = vector.load %arg0[%317, %c0_67, %c0_68] : memref<8x8x32xf32, #tpu.memory_space<vmem>>, vector<1x8x32xf32>
    %319 = vector.shape_cast %318 : vector<1x8x32xf32> to vector<8x32xf32>
    %320 = tpu.concatenate %319, %287 in 1 : vector<8x32xf32>, vector<8x32xf32> -> vector<8x64xf32>
    %cst_69 = arith.constant dense<0.000000e+00> : vector<8x128xf32>
    %321 = tpu.matmul %320, %0, %cst_69 {dimension_numbers = #tpu.dot_dimension_numbers<[1], [0], [0], [1], [0, 0, 1, 1], [], []>} : vector<8x64xf32>, vector<64x128xf32>, vector<8x128xf32> -> vector<8x128xf32>
    %322 = vector.broadcast %1 : vector<1x128xf32> to vector<8x128xf32>
    %323 = arith.addf %321, %322 : vector<8x128xf32>
    %324 = vector.extract_strided_slice %323 {offsets = [0, 0], sizes = [8, 32], strides = [1, 1]} : vector<8x128xf32> to vector<8x32xf32>
    %325 = arith.negf %324 : vector<8x32xf32>
    %326 = math.exp %325 : vector<8x32xf32>
    %cst_70 = arith.constant 1.000000e+00 : f32
    %327 = vector.broadcast %cst_70 : f32 to vector<8x32xf32>
    %328 = arith.addf %327, %326 : vector<8x32xf32>
    %329 = arith.divf %327, %328 : vector<8x32xf32>
    %330 = vector.extract_strided_slice %323 {offsets = [0, 32], sizes = [8, 32], strides = [1, 1]} : vector<8x128xf32> to vector<8x32xf32>
    %331 = arith.negf %330 : vector<8x32xf32>
    %332 = math.exp %331 : vector<8x32xf32>
    %cst_71 = arith.constant 1.000000e+00 : f32
    %333 = vector.broadcast %cst_71 : f32 to vector<8x32xf32>
    %334 = arith.addf %333, %332 : vector<8x32xf32>
    %335 = arith.divf %333, %334 : vector<8x32xf32>
    %336 = vector.extract_strided_slice %323 {offsets = [0, 64], sizes = [8, 32], strides = [1, 1]} : vector<8x128xf32> to vector<8x32xf32>
    %337 = math.tanh %336 : vector<8x32xf32>
    %338 = vector.extract_strided_slice %323 {offsets = [0, 96], sizes = [8, 32], strides = [1, 1]} : vector<8x128xf32> to vector<8x32xf32>
    %339 = arith.negf %338 : vector<8x32xf32>
    %340 = math.exp %339 : vector<8x32xf32>
    %cst_72 = arith.constant 1.000000e+00 : f32
    %341 = vector.broadcast %cst_72 : f32 to vector<8x32xf32>
    %342 = arith.addf %341, %340 : vector<8x32xf32>
    %343 = arith.divf %341, %342 : vector<8x32xf32>
    %344 = arith.mulf %335, %285 : vector<8x32xf32>
    %345 = arith.mulf %329, %337 : vector<8x32xf32>
    %346 = arith.addf %344, %345 : vector<8x32xf32>
    %347 = math.tanh %346 : vector<8x32xf32>
    %348 = arith.mulf %343, %347 : vector<8x32xf32>
    %349 = tpu.concatenate %348, %316 in 1 : vector<8x32xf32>, vector<8x32xf32> -> vector<8x64xf32>
    %cst_73 = arith.constant dense<0.000000e+00> : vector<8x128xf32>
    %350 = tpu.matmul %349, %2, %cst_73 {dimension_numbers = #tpu.dot_dimension_numbers<[1], [0], [0], [1], [0, 0, 1, 1], [], []>} : vector<8x64xf32>, vector<64x128xf32>, vector<8x128xf32> -> vector<8x128xf32>
    %351 = vector.broadcast %3 : vector<1x128xf32> to vector<8x128xf32>
    %352 = arith.addf %350, %351 : vector<8x128xf32>
    %353 = vector.extract_strided_slice %352 {offsets = [0, 0], sizes = [8, 32], strides = [1, 1]} : vector<8x128xf32> to vector<8x32xf32>
    %354 = arith.negf %353 : vector<8x32xf32>
    %355 = math.exp %354 : vector<8x32xf32>
    %cst_74 = arith.constant 1.000000e+00 : f32
    %356 = vector.broadcast %cst_74 : f32 to vector<8x32xf32>
    %357 = arith.addf %356, %355 : vector<8x32xf32>
    %358 = arith.divf %356, %357 : vector<8x32xf32>
    %359 = vector.extract_strided_slice %352 {offsets = [0, 32], sizes = [8, 32], strides = [1, 1]} : vector<8x128xf32> to vector<8x32xf32>
    %360 = arith.negf %359 : vector<8x32xf32>
    %361 = math.exp %360 : vector<8x32xf32>
    %cst_75 = arith.constant 1.000000e+00 : f32
    %362 = vector.broadcast %cst_75 : f32 to vector<8x32xf32>
    %363 = arith.addf %362, %361 : vector<8x32xf32>
    %364 = arith.divf %362, %363 : vector<8x32xf32>
    %365 = vector.extract_strided_slice %352 {offsets = [0, 64], sizes = [8, 32], strides = [1, 1]} : vector<8x128xf32> to vector<8x32xf32>
    %366 = math.tanh %365 : vector<8x32xf32>
    %367 = vector.extract_strided_slice %352 {offsets = [0, 96], sizes = [8, 32], strides = [1, 1]} : vector<8x128xf32> to vector<8x32xf32>
    %368 = arith.negf %367 : vector<8x32xf32>
    %369 = math.exp %368 : vector<8x32xf32>
    %cst_76 = arith.constant 1.000000e+00 : f32
    %370 = vector.broadcast %cst_76 : f32 to vector<8x32xf32>
    %371 = arith.addf %370, %369 : vector<8x32xf32>
    %372 = arith.divf %370, %371 : vector<8x32xf32>
    %373 = arith.mulf %364, %314 : vector<8x32xf32>
    %374 = arith.mulf %358, %366 : vector<8x32xf32>
    %375 = arith.addf %373, %374 : vector<8x32xf32>
    %376 = math.tanh %375 : vector<8x32xf32>
    %377 = arith.mulf %372, %376 : vector<8x32xf32>
    %c6_i32 = arith.constant 6 : i32
    %378 = arith.index_cast %c6_i32 : i32 to index
    %c0_77 = arith.constant 0 : index
    %c0_78 = arith.constant 0 : index
    %379 = vector.load %arg0[%378, %c0_77, %c0_78] : memref<8x8x32xf32, #tpu.memory_space<vmem>>, vector<1x8x32xf32>
    %380 = vector.shape_cast %379 : vector<1x8x32xf32> to vector<8x32xf32>
    %381 = tpu.concatenate %380, %348 in 1 : vector<8x32xf32>, vector<8x32xf32> -> vector<8x64xf32>
    %cst_79 = arith.constant dense<0.000000e+00> : vector<8x128xf32>
    %382 = tpu.matmul %381, %0, %cst_79 {dimension_numbers = #tpu.dot_dimension_numbers<[1], [0], [0], [1], [0, 0, 1, 1], [], []>} : vector<8x64xf32>, vector<64x128xf32>, vector<8x128xf32> -> vector<8x128xf32>
    %383 = vector.broadcast %1 : vector<1x128xf32> to vector<8x128xf32>
    %384 = arith.addf %382, %383 : vector<8x128xf32>
    %385 = vector.extract_strided_slice %384 {offsets = [0, 0], sizes = [8, 32], strides = [1, 1]} : vector<8x128xf32> to vector<8x32xf32>
    %386 = arith.negf %385 : vector<8x32xf32>
    %387 = math.exp %386 : vector<8x32xf32>
    %cst_80 = arith.constant 1.000000e+00 : f32
    %388 = vector.broadcast %cst_80 : f32 to vector<8x32xf32>
    %389 = arith.addf %388, %387 : vector<8x32xf32>
    %390 = arith.divf %388, %389 : vector<8x32xf32>
    %391 = vector.extract_strided_slice %384 {offsets = [0, 32], sizes = [8, 32], strides = [1, 1]} : vector<8x128xf32> to vector<8x32xf32>
    %392 = arith.negf %391 : vector<8x32xf32>
    %393 = math.exp %392 : vector<8x32xf32>
    %cst_81 = arith.constant 1.000000e+00 : f32
    %394 = vector.broadcast %cst_81 : f32 to vector<8x32xf32>
    %395 = arith.addf %394, %393 : vector<8x32xf32>
    %396 = arith.divf %394, %395 : vector<8x32xf32>
    %397 = vector.extract_strided_slice %384 {offsets = [0, 64], sizes = [8, 32], strides = [1, 1]} : vector<8x128xf32> to vector<8x32xf32>
    %398 = math.tanh %397 : vector<8x32xf32>
    %399 = vector.extract_strided_slice %384 {offsets = [0, 96], sizes = [8, 32], strides = [1, 1]} : vector<8x128xf32> to vector<8x32xf32>
    %400 = arith.negf %399 : vector<8x32xf32>
    %401 = math.exp %400 : vector<8x32xf32>
    %cst_82 = arith.constant 1.000000e+00 : f32
    %402 = vector.broadcast %cst_82 : f32 to vector<8x32xf32>
    %403 = arith.addf %402, %401 : vector<8x32xf32>
    %404 = arith.divf %402, %403 : vector<8x32xf32>
    %405 = arith.mulf %396, %346 : vector<8x32xf32>
    %406 = arith.mulf %390, %398 : vector<8x32xf32>
    %407 = arith.addf %405, %406 : vector<8x32xf32>
    %408 = math.tanh %407 : vector<8x32xf32>
    %409 = arith.mulf %404, %408 : vector<8x32xf32>
    %410 = tpu.concatenate %409, %377 in 1 : vector<8x32xf32>, vector<8x32xf32> -> vector<8x64xf32>
    %cst_83 = arith.constant dense<0.000000e+00> : vector<8x128xf32>
    %411 = tpu.matmul %410, %2, %cst_83 {dimension_numbers = #tpu.dot_dimension_numbers<[1], [0], [0], [1], [0, 0, 1, 1], [], []>} : vector<8x64xf32>, vector<64x128xf32>, vector<8x128xf32> -> vector<8x128xf32>
    %412 = vector.broadcast %3 : vector<1x128xf32> to vector<8x128xf32>
    %413 = arith.addf %411, %412 : vector<8x128xf32>
    %414 = vector.extract_strided_slice %413 {offsets = [0, 0], sizes = [8, 32], strides = [1, 1]} : vector<8x128xf32> to vector<8x32xf32>
    %415 = arith.negf %414 : vector<8x32xf32>
    %416 = math.exp %415 : vector<8x32xf32>
    %cst_84 = arith.constant 1.000000e+00 : f32
    %417 = vector.broadcast %cst_84 : f32 to vector<8x32xf32>
    %418 = arith.addf %417, %416 : vector<8x32xf32>
    %419 = arith.divf %417, %418 : vector<8x32xf32>
    %420 = vector.extract_strided_slice %413 {offsets = [0, 32], sizes = [8, 32], strides = [1, 1]} : vector<8x128xf32> to vector<8x32xf32>
    %421 = arith.negf %420 : vector<8x32xf32>
    %422 = math.exp %421 : vector<8x32xf32>
    %cst_85 = arith.constant 1.000000e+00 : f32
    %423 = vector.broadcast %cst_85 : f32 to vector<8x32xf32>
    %424 = arith.addf %423, %422 : vector<8x32xf32>
    %425 = arith.divf %423, %424 : vector<8x32xf32>
    %426 = vector.extract_strided_slice %413 {offsets = [0, 64], sizes = [8, 32], strides = [1, 1]} : vector<8x128xf32> to vector<8x32xf32>
    %427 = math.tanh %426 : vector<8x32xf32>
    %428 = vector.extract_strided_slice %413 {offsets = [0, 96], sizes = [8, 32], strides = [1, 1]} : vector<8x128xf32> to vector<8x32xf32>
    %429 = arith.negf %428 : vector<8x32xf32>
    %430 = math.exp %429 : vector<8x32xf32>
    %cst_86 = arith.constant 1.000000e+00 : f32
    %431 = vector.broadcast %cst_86 : f32 to vector<8x32xf32>
    %432 = arith.addf %431, %430 : vector<8x32xf32>
    %433 = arith.divf %431, %432 : vector<8x32xf32>
    %434 = arith.mulf %425, %375 : vector<8x32xf32>
    %435 = arith.mulf %419, %427 : vector<8x32xf32>
    %436 = arith.addf %434, %435 : vector<8x32xf32>
    %437 = math.tanh %436 : vector<8x32xf32>
    %438 = arith.mulf %433, %437 : vector<8x32xf32>
    %c7_i32 = arith.constant 7 : i32
    %439 = arith.index_cast %c7_i32 : i32 to index
    %c0_87 = arith.constant 0 : index
    %c0_88 = arith.constant 0 : index
    %440 = vector.load %arg0[%439, %c0_87, %c0_88] : memref<8x8x32xf32, #tpu.memory_space<vmem>>, vector<1x8x32xf32>
    %441 = vector.shape_cast %440 : vector<1x8x32xf32> to vector<8x32xf32>
    %442 = tpu.concatenate %441, %409 in 1 : vector<8x32xf32>, vector<8x32xf32> -> vector<8x64xf32>
    %cst_89 = arith.constant dense<0.000000e+00> : vector<8x128xf32>
    %443 = tpu.matmul %442, %0, %cst_89 {dimension_numbers = #tpu.dot_dimension_numbers<[1], [0], [0], [1], [0, 0, 1, 1], [], []>} : vector<8x64xf32>, vector<64x128xf32>, vector<8x128xf32> -> vector<8x128xf32>
    %444 = vector.broadcast %1 : vector<1x128xf32> to vector<8x128xf32>
    %445 = arith.addf %443, %444 : vector<8x128xf32>
    %446 = vector.extract_strided_slice %445 {offsets = [0, 0], sizes = [8, 32], strides = [1, 1]} : vector<8x128xf32> to vector<8x32xf32>
    %447 = arith.negf %446 : vector<8x32xf32>
    %448 = math.exp %447 : vector<8x32xf32>
    %cst_90 = arith.constant 1.000000e+00 : f32
    %449 = vector.broadcast %cst_90 : f32 to vector<8x32xf32>
    %450 = arith.addf %449, %448 : vector<8x32xf32>
    %451 = arith.divf %449, %450 : vector<8x32xf32>
    %452 = vector.extract_strided_slice %445 {offsets = [0, 32], sizes = [8, 32], strides = [1, 1]} : vector<8x128xf32> to vector<8x32xf32>
    %453 = arith.negf %452 : vector<8x32xf32>
    %454 = math.exp %453 : vector<8x32xf32>
    %cst_91 = arith.constant 1.000000e+00 : f32
    %455 = vector.broadcast %cst_91 : f32 to vector<8x32xf32>
    %456 = arith.addf %455, %454 : vector<8x32xf32>
    %457 = arith.divf %455, %456 : vector<8x32xf32>
    %458 = vector.extract_strided_slice %445 {offsets = [0, 64], sizes = [8, 32], strides = [1, 1]} : vector<8x128xf32> to vector<8x32xf32>
    %459 = math.tanh %458 : vector<8x32xf32>
    %460 = vector.extract_strided_slice %445 {offsets = [0, 96], sizes = [8, 32], strides = [1, 1]} : vector<8x128xf32> to vector<8x32xf32>
    %461 = arith.negf %460 : vector<8x32xf32>
    %462 = math.exp %461 : vector<8x32xf32>
    %cst_92 = arith.constant 1.000000e+00 : f32
    %463 = vector.broadcast %cst_92 : f32 to vector<8x32xf32>
    %464 = arith.addf %463, %462 : vector<8x32xf32>
    %465 = arith.divf %463, %464 : vector<8x32xf32>
    %466 = arith.mulf %457, %407 : vector<8x32xf32>
    %467 = arith.mulf %451, %459 : vector<8x32xf32>
    %468 = arith.addf %466, %467 : vector<8x32xf32>
    %469 = math.tanh %468 : vector<8x32xf32>
    %470 = arith.mulf %465, %469 : vector<8x32xf32>
    %471 = tpu.concatenate %470, %438 in 1 : vector<8x32xf32>, vector<8x32xf32> -> vector<8x64xf32>
    %cst_93 = arith.constant dense<0.000000e+00> : vector<8x128xf32>
    %472 = tpu.matmul %471, %2, %cst_93 {dimension_numbers = #tpu.dot_dimension_numbers<[1], [0], [0], [1], [0, 0, 1, 1], [], []>} : vector<8x64xf32>, vector<64x128xf32>, vector<8x128xf32> -> vector<8x128xf32>
    %473 = vector.broadcast %3 : vector<1x128xf32> to vector<8x128xf32>
    %474 = arith.addf %472, %473 : vector<8x128xf32>
    %475 = vector.extract_strided_slice %474 {offsets = [0, 0], sizes = [8, 32], strides = [1, 1]} : vector<8x128xf32> to vector<8x32xf32>
    %476 = arith.negf %475 : vector<8x32xf32>
    %477 = math.exp %476 : vector<8x32xf32>
    %cst_94 = arith.constant 1.000000e+00 : f32
    %478 = vector.broadcast %cst_94 : f32 to vector<8x32xf32>
    %479 = arith.addf %478, %477 : vector<8x32xf32>
    %480 = arith.divf %478, %479 : vector<8x32xf32>
    %481 = vector.extract_strided_slice %474 {offsets = [0, 32], sizes = [8, 32], strides = [1, 1]} : vector<8x128xf32> to vector<8x32xf32>
    %482 = arith.negf %481 : vector<8x32xf32>
    %483 = math.exp %482 : vector<8x32xf32>
    %cst_95 = arith.constant 1.000000e+00 : f32
    %484 = vector.broadcast %cst_95 : f32 to vector<8x32xf32>
    %485 = arith.addf %484, %483 : vector<8x32xf32>
    %486 = arith.divf %484, %485 : vector<8x32xf32>
    %487 = vector.extract_strided_slice %474 {offsets = [0, 64], sizes = [8, 32], strides = [1, 1]} : vector<8x128xf32> to vector<8x32xf32>
    %488 = math.tanh %487 : vector<8x32xf32>
    %489 = vector.extract_strided_slice %474 {offsets = [0, 96], sizes = [8, 32], strides = [1, 1]} : vector<8x128xf32> to vector<8x32xf32>
    %490 = arith.negf %489 : vector<8x32xf32>
    %491 = math.exp %490 : vector<8x32xf32>
    %cst_96 = arith.constant 1.000000e+00 : f32
    %492 = vector.broadcast %cst_96 : f32 to vector<8x32xf32>
    %493 = arith.addf %492, %491 : vector<8x32xf32>
    %494 = arith.divf %492, %493 : vector<8x32xf32>
    %495 = arith.mulf %486, %436 : vector<8x32xf32>
    %496 = arith.mulf %480, %488 : vector<8x32xf32>
    %497 = arith.addf %495, %496 : vector<8x32xf32>
    %498 = math.tanh %497 : vector<8x32xf32>
    %499 = arith.mulf %494, %498 : vector<8x32xf32>
    %c8_i32 = arith.constant 8 : i32
    %c0_97 = arith.constant 0 : index
    %c0_98 = arith.constant 0 : index
    %c0_99 = arith.constant 0 : index
    %500 = vector.load %arg10[%c0_97, %c0_98, %c0_99] : memref<2x8x32xf32, #tpu.memory_space<vmem>>, vector<1x8x32xf32>
    %501 = vector.shape_cast %500 : vector<1x8x32xf32> to vector<8x32xf32>
    %502 = vector.shape_cast %470 : vector<8x32xf32> to vector<1x8x32xf32>
    tpu.vector_store %arg10[%c0_97, %c0_98, %c0_99], %502 {strides = array<i32>} : memref<2x8x32xf32, #tpu.memory_space<vmem>>, vector<1x8x32xf32>,
    %c0_100 = arith.constant 0 : index
    %c0_101 = arith.constant 0 : index
    %c0_102 = arith.constant 0 : index
    %503 = vector.load %arg11[%c0_100, %c0_101, %c0_102] : memref<2x8x32xf32, #tpu.memory_space<vmem>>, vector<1x8x32xf32>
    %504 = vector.shape_cast %503 : vector<1x8x32xf32> to vector<8x32xf32>
    %505 = vector.shape_cast %468 : vector<8x32xf32> to vector<1x8x32xf32>
    tpu.vector_store %arg11[%c0_100, %c0_101, %c0_102], %505 {strides = array<i32>} : memref<2x8x32xf32, #tpu.memory_space<vmem>>, vector<1x8x32xf32>,
    %c1_103 = arith.constant 1 : index
    %c0_104 = arith.constant 0 : index
    %c0_105 = arith.constant 0 : index
    %506 = vector.load %arg10[%c1_103, %c0_104, %c0_105] : memref<2x8x32xf32, #tpu.memory_space<vmem>>, vector<1x8x32xf32>
    %507 = vector.shape_cast %506 : vector<1x8x32xf32> to vector<8x32xf32>
    %508 = vector.shape_cast %499 : vector<8x32xf32> to vector<1x8x32xf32>
    tpu.vector_store %arg10[%c1_103, %c0_104, %c0_105], %508 {strides = array<i32>} : memref<2x8x32xf32, #tpu.memory_space<vmem>>, vector<1x8x32xf32>,
    %c1_106 = arith.constant 1 : index
    %c0_107 = arith.constant 0 : index
    %c0_108 = arith.constant 0 : index
    %509 = vector.load %arg11[%c1_106, %c0_107, %c0_108] : memref<2x8x32xf32, #tpu.memory_space<vmem>>, vector<1x8x32xf32>
    %510 = vector.shape_cast %509 : vector<1x8x32xf32> to vector<8x32xf32>
    %511 = vector.shape_cast %497 : vector<8x32xf32> to vector<1x8x32xf32>
    tpu.vector_store %arg11[%c1_106, %c0_107, %c0_108], %511 {strides = array<i32>} : memref<2x8x32xf32, #tpu.memory_space<vmem>>, vector<1x8x32xf32>,
    %c0_109 = arith.constant 0 : index
    %c0_110 = arith.constant 0 : index
    %512 = vector.load %arg7[%c0_109, %c0_110] : memref<32x1xf32, #tpu.memory_space<vmem>>, vector<32x1xf32>
    %cst_111 = arith.constant dense<0.000000e+00> : vector<8x1xf32>
    %513 = tpu.matmul %499, %512, %cst_111 {dimension_numbers = #tpu.dot_dimension_numbers<[1], [0], [0], [1], [0, 0, 1, 1], [], []>} : vector<8x32xf32>, vector<32x1xf32>, vector<8x1xf32> -> vector<8x1xf32>
    %c0_112 = arith.constant 0 : index
    %c0_113 = arith.constant 0 : index
    %514 = vector.load %arg8[%c0_112, %c0_113] : memref<1x1xf32, #tpu.memory_space<vmem>>, vector<1x1xf32>
    %515 = vector.broadcast %514 : vector<1x1xf32> to vector<8x1xf32>
    %516 = arith.addf %513, %515 : vector<8x1xf32>
    %517 = arith.negf %516 : vector<8x1xf32>
    %518 = math.exp %517 : vector<8x1xf32>
    %cst_114 = arith.constant 1.000000e+00 : f32
    %519 = vector.broadcast %cst_114 : f32 to vector<8x1xf32>
    %520 = arith.addf %519, %518 : vector<8x1xf32>
    %521 = arith.divf %519, %520 : vector<8x1xf32>
    %c0_115 = arith.constant 0 : index
    %c0_116 = arith.constant 0 : index
    %522 = vector.load %arg9[%c0_115, %c0_116] : memref<8x1xf32, #tpu.memory_space<vmem>>, vector<8x1xf32>
    tpu.vector_store %arg9[%c0_115, %c0_116], %521 {strides = array<i32>} : memref<8x1xf32, #tpu.memory_space<vmem>>, vector<8x1xf32>,
    return
  }
}

</mosaic_0001>

<bundles_post_ra>
// kernel: sentiment_forward.1
= control target key start
LH: loop header
LB: loop body
LE: loop exit
PB: predicated region body
PF: predicated region fallthrough
CT: control target
= control target key end

     0   :  { %v2725_v1 = vmov 0.0|0.0   ;;  %vm2726_vm0 = vmmov 0   ;;  %v2727_v4 = vmov 0.0   ;;  %s2728_s23 = smov 32   ;;  %vm66_vm1 = vcmask 261120   ;;  %s2729_s22 = smov 64   ;;  %s3277_s1 = inlined_call_operand.vmem [shape: f32[2,8,32], index: 1, kind: input, shape index: {}, may-alias: {1,10}]   ;;  %s3278_s3 = inlined_call_operand.vmem [shape: f32[64,128], index: 3, kind: input, shape index: {}]   ;;  %s3279_s2 = inlined_call_operand.vmem [shape: f32[2,8,32], index: 2, kind: input, shape index: {}, may-alias: {2,11}]   ;;  %s3280_s0 = inlined_call_operand.vmem [shape: f32[8,8,32], index: 0, kind: input, shape index: {}]   ;;  %s3281_s4 = inlined_call_operand.vmem [shape: f32[1,128], index: 4, kind: input, shape index: {}]   ;;  %s3282_s5 = inlined_call_operand.vmem [shape: f32[64,128], index: 5, kind: input, shape index: {}]   ;;  %s3283_s6 = inlined_call_operand.vmem [shape: f32[1,128], index: 6, kind: input, shape index: {}]   ;;  %s3284_s10 = inlined_call_operand.vmem [shape: f32[2,8,32], index: 10, kind: output, shape index: {1}, may-alias: {1,10}]   ;;  %s3285_s7 = inlined_call_operand.vmem [shape: f32[32,1], index: 7, kind: input, shape index: {}]   ;;  %s3286_s8 = inlined_call_operand.<no memory space> [shape: f32[1,1], index: 8, kind: input, shape index: {}]   ;;  %s3287_s11 = inlined_call_operand.vmem [shape: f32[2,8,32], index: 11, kind: output, shape index: {2}, may-alias: {2,11}]   ;;  %s3288_s9 = inlined_call_operand.vmem [shape: f32[8,1], index: 9, kind: output, shape index: {0}]  }
   0x1   :  { %v55_v0 = vld [vmem:[%s3277_s1] sm:$0xff]  ;;  %2388 = vmatprep.subr.bf16.mxu0 %v2725_v1  ;;  %v38_v3 = vld [vmem:[%s3278_s3 + $0x8] sm:$0xff]  ;;  %2089 = vmatprep.mubr.msk.f32.mxu0 %vm2726_vm0, %v2727_v4  ;;  %v39_v6 = vld [vmem:[%s3278_s3 + $0x10] sm:$0xff]  ;;  %vm74_vm2 = vcmask 523264   ;;  %vm1862_vm3 = vcmask 7168  }
   0x2   :  { %v37_v2 = vld [vmem:[%s3278_s3] sm:$0xff]  ;;  %63 = vrot.lane.b32.xlu0 %v55_v0, %s2728_s23  ;;  %v40_v7 = vld [vmem:[%s3278_s3 + $0x18] sm:$0xff]  ;;  %2400 = vmatprep.subr.bf16.mxu1 %v2725_v1  ;;  %v42_v11 = vld [vmem:[%s3278_s3 + $0x28] sm:$0xff] }
   0x3   :  { %v2804_v5 = vpack.c.bf16 %v38_v3, %v37_v2  ;;  %2108 = vmatprep.mubr.msk.f32.mxu1 %vm2726_vm0, %v2727_v4  ;;  %v2816_v8 = vpack.c.bf16 %v40_v7, %v39_v6  ;;  %v56_v9 = vld [vmem:[%s3279_s2] sm:$0xff]  ;;  %v43_v13 = vld [vmem:[%s3278_s3 + $0x30] sm:$0xff]  ;;  %v44_v14 = vld [vmem:[%s3278_s3 + $0x38] sm:$0xff] }
   0x4   :  { %v41_v10 = vld [vmem:[%s3278_s3 + $0x20] sm:$0xff]  ;;  %156 = vrot.lane.b32.xlu1 %v56_v9, %s2728_s23  ;;  %v2840_v15 = vpack.c.bf16 %v44_v14, %v43_v13  ;;  %v47_v35 = vld [vmem:[%s3282_s5 + $0x8] sm:$0xff]  ;;  %v48_v36 = vld [vmem:[%s3282_s5 + $0x10] sm:$0xff] }
   0x5   :  { %2390 = vmatpush3.bf16.msra.mxu0 %v2804_v5  ;;  %v2830_v12 = vpack.c.bf16 %v42_v11, %v41_v10  ;;  %v61_v16 = vld [vmem:[%s3280_s0] sm:$0xff]  ;;  %v49_v38 = vld [vmem:[%s3282_s5 + $0x18] sm:$0xff]  ;;  %v51_v41 = vld [vmem:[%s3282_s5 + $0x28] sm:$0xff] }
   0x6   :  { %2391 = vmatprep.subr.bf16.mxu0 %v2725_v1  ;;  %v2863_v19 = vld [vmem:[%s3281_s4] ss:$0 sm:$0xff]  ;;  %v2886_v39 = vpack.c.bf16 %v49_v38, %v48_v36  ;;  %v1876_v43 = vld [vmem:[%s3277_s1 + $0x8] sm:$0xff]  ;;  %v52_v45 = vld [vmem:[%s3282_s5 + $0x30] sm:$0xff] }
   0x7   :  { %v46_v34 = vld [vmem:[%s3282_s5] sm:$0xff]  ;;  %v53_v46 = vld [vmem:[%s3282_s5 + $0x38] sm:$0xff]  ;;  %v1884_v53 = vld [vmem:[%s3280_s0 + $0x8] sm:$0xff] }
   0x8   :  { %v2880_v37 = vpack.c.bf16 %v47_v35, %v46_v34  ;;  %v50_v40 = vld [vmem:[%s3282_s5 + $0x20] sm:$0xff]  ;;  %v2911_v47 = vpack.c.bf16 %v53_v46, %v52_v45  ;;  %v1877_v0 = vld [vmem:[%s3279_s2 + $0x8] sm:$0xff]  ;;  %v1889_v38 = vld [vmem:[%s3280_s0 + $0x10] sm:$0xff]  ;;  %s2730_s2 = smov 96  }
   0x9   :  { %2393 = vmatpush3.bf16.msra.mxu0 %v2816_v8  ;;  %v2900_v44 = vpack.c.bf16 %v51_v41, %v50_v40  ;;  %v2948_v56 = vld [vmem:[%s3283_s6] ss:$0 sm:$0xff] }
   0xa   :  { %2394 = vmatprep.subr.bf16.mxu0 %v2725_v1  ;;  %2402 = vmatpush3.bf16.msra.mxu1 %v2880_v37 }
   0xb   :  { %2403 = vmatprep.subr.bf16.mxu1 %v2725_v1 }
   0xd   :  { %2396 = vmatpush3.bf16.msra.mxu0 %v2830_v12 }
   0xe   :  { %2397 = vmatprep.subr.bf16.mxu0 %v2725_v1  ;;  %2405 = vmatpush3.bf16.msra.mxu1 %v2886_v39 }
   0xf   :  { %2406 = vmatprep.subr.bf16.mxu1 %v2725_v1 }
  0x11   :  { %2399 = vmatpush3.bf16.msra.mxu0 %v2840_v15 }
  0x12   :  { %2412 = vmatprep.subr.bf16.mxu0 %v2725_v1  ;;  %2408 = vmatpush3.bf16.msra.mxu1 %v2900_v44 }
  0x13   :  { %2409 = vmatprep.subr.bf16.mxu1 %v2725_v1 }
  0x16   :  { %2411 = vmatpush3.bf16.msra.mxu1 %v2911_v47 }
  0x17   :  { %2424 = vmatprep.subr.bf16.mxu1 %v2725_v1 }
  0x74   :  { %v64_v17 = vpop.permute.xlu0 %63 }
  0x75   :  { %v67_v18 = vsel %vm66_vm1, %v61_v16, %v64_v17 }
  0x76   :  { %2090 = vmatmul.mubr.msk.f32.vlgmr.msra.gmra.mrb[0].mxu0 %vm74_vm2, %v67_v18  ;;  %v157_v30 = vpop.permute.xlu1 %156 }
  0x77   :  { %2414 = vmatpush3.bf16.msra.mxu0 %v2804_v5  ;;  %2127 = vmatprep.mubr.msk.f32.mxu0 %vm2726_vm0, %v2727_v4 }
  0x78   :  { %2415 = vmatprep.subr.bf16.mxu0 %v2725_v1 }
  0x7b   :  { %2417 = vmatpush3.bf16.msra.mxu0 %v2816_v8 }
  0x7c   :  { %2418 = vmatprep.subr.bf16.mxu0 %v2725_v1 }
  0x7f   :  { %2420 = vmatpush3.bf16.msra.mxu0 %v2830_v12 }
  0x80   :  { %2421 = vmatprep.subr.bf16.mxu0 %v2725_v1 }
  0x83   :  { %2423 = vmatpush3.bf16.msra.mxu0 %v2840_v15 }
  0x84   :  { %2436 = vmatprep.subr.bf16.mxu0 %v2725_v1 }
 0x149   :  { %v144_v20 = vpop.f32.mrb[0].mxu0 }
 0x14a   :  { %v145_v21 = vadd.f32 %v2863_v19, %v144_v20  ;;  %v2091_v22 = vpop.f32.mrb[1].mxu0 }
 0x14c   :  { %2592 = vtanh.f32 %v145_v21  ;;  %v1880_v24 = vmul.f32 -1.442695, %v145_v21 }
 0x14e   :  { %2594 = vpow2.f32 %v1880_v24 }
 0x156   :  { %v2593_v23 = vpop.eup %2592 }
 0x157   :  { %161 = vrot.lane.b32.xlu0 %v2593_v23, %s2729_s22 }
 0x158   :  { %v2595_v25 = vpop.eup %2594 }
 0x159   :  { %v151_v26 = vadd.f32 1.0, %v2595_v25 }
 0x15b   :  { %2596 = vrcp.f32 %v151_v26 }
 0x165   :  { %v2597_v27 = vpop.eup %2596 }
 0x166   :  { %v159_v31 = vmul.f32 %v2597_v27, %v157_v30 }
 0x1c9   :  { %v162_v28 = vpop.permute.xlu0 %161 }
 0x1ca   :  { %v164_v29 = vmul.f32 %v2597_v27, %v162_v28 }
 0x1cc   :  { %166 = vrot.lane.b32.xlu1 %v164_v29, %s2728_s23 }
 0x23e   :  { %v167_v32 = vpop.permute.xlu1 %166 }
 0x23f   :  { %v2868_v33 = vadd.f32 %v167_v32, %v159_v31 }
 0x241   :  { %2598 = vtanh.f32 %v2868_v33 }
 0x24b   :  { %v2599_v42 = vpop.eup %2598 }
 0x24c   :  { %172 = vrot.lane.b32.xlu0 %v2599_v42, %s2729_s22 }
 0x250   :  { %181 = vrot.lane.b32.xlu0 %v1876_v43, %s2728_s23 }
 0x2be   :  { %v173_v48 = vpop.permute.xlu0 %172 }
 0x2bf   :  { %v175_v49 = vmul.f32 %v2597_v27, %v173_v48 }
 0x2c1   :  { %177 = vrot.lane.b32.xlu1 %v175_v49, %s2728_s23 }
 0x2c2   :  { %v182_v50 = vpop.permute.xlu0 %181 }
 0x2c5   :  { %294 = vrot.lane.b32.xlu1 %v175_v49, %s2729_s22 }
 0x333   :  { %v178_v51 = vpop.permute.xlu1 %177 }
 0x334   :  { %v184_v52 = vsel %vm66_vm1, %v178_v51, %v182_v50 }
 0x335   :  { %2109 = vmatmul.mubr.msk.f32.vlgmr.msra.gmra.mrb[0].mxu1 %vm74_vm2, %v184_v52 }
 0x336   :  { %2426 = vmatpush3.bf16.msra.mxu1 %v2880_v37  ;;  %2146 = vmatprep.mubr.msk.f32.mxu1 %vm2726_vm0, %v2727_v4 }
 0x337   :  { %v295_v54 = vpop.permute.xlu1 %294  ;;  %2427 = vmatprep.subr.bf16.mxu1 %v2725_v1 }
 0x338   :  { %v297_v55 = vsel %vm66_vm1, %v1884_v53, %v295_v54 }
 0x339   :  { %2128 = vmatmul.mubr.msk.f32.vlgmr.msra.gmra.mrb[2].mxu0 %vm74_vm2, %v297_v55 }
 0x33a   :  { %2429 = vmatpush3.bf16.msra.mxu1 %v2886_v39  ;;  %2438 = vmatpush3.bf16.msra.mxu0 %v2804_v5 }
 0x33b   :  { %2430 = vmatprep.subr.bf16.mxu1 %v2725_v1  ;;  %2439 = vmatprep.subr.bf16.mxu0 %v2725_v1 }
 0x33c   :  { %2165 = vmatprep.mubr.msk.f32.mxu0 %vm2726_vm0, %v2727_v4 }
 0x33e   :  { %2432 = vmatpush3.bf16.msra.mxu1 %v2900_v44  ;;  %2441 = vmatpush3.bf16.msra.mxu0 %v2816_v8 }
 0x33f   :  { %2433 = vmatprep.subr.bf16.mxu1 %v2725_v1  ;;  %2442 = vmatprep.subr.bf16.mxu0 %v2725_v1 }
 0x342   :  { %2435 = vmatpush3.bf16.msra.mxu1 %v2911_v47  ;;  %2444 = vmatpush3.bf16.msra.mxu0 %v2830_v12 }
 0x343   :  { %2445 = vmatprep.subr.bf16.mxu0 %v2725_v1  ;;  %2448 = vmatprep.subr.bf16.mxu1 %v2725_v1 }
 0x346   :  { %2447 = vmatpush3.bf16.msra.mxu0 %v2840_v15 }
 0x347   :  { %2460 = vmatprep.subr.bf16.mxu0 %v2725_v1 }
 0x408   :  { %v260_v57 = vpop.f32.mrb[0].mxu1 }
 0x409   :  { %v261_v58 = vadd.f32 %v2948_v56, %v260_v57  ;;  %v2110_v59 = vpop.f32.mrb[1].mxu1 }
 0x40b   :  { %2600 = vtanh.f32 %v261_v58  ;;  %v1883_v3 = vmul.f32 -1.442695, %v261_v58 }
 0x40c   :  { %v367_v60 = vpop.f32.mrb[2].mxu0 }
 0x40d   :  { %v368_v61 = vadd.f32 %v2863_v19, %v367_v60  ;;  %v2129_v62 = vpop.f32.mrb[3].mxu0 }
 0x40f   :  { %2602 = vtanh.f32 %v368_v61  ;;  %v1886_v6 = vmul.f32 -1.442695, %v368_v61 }
 0x410   :  { %2604 = vpow2.f32 %v1883_v3 }
 0x411   :  { %2606 = vpow2.f32 %v1886_v6 }
 0x415   :  { %v2601_v63 = vpop.eup %2600 }
 0x416   :  { %277 = vrot.lane.b32.xlu0 %v2601_v63, %s2729_s22 }
 0x419   :  { %v2603_v2 = vpop.eup %2602 }
 0x41a   :  { %272 = vrot.lane.b32.xlu0 %v1877_v0, %s2728_s23  ;;  %380 = vrot.lane.b32.xlu1 %v2603_v2, %s2729_s22  ;;  %v2605_v7 = vpop.eup %2604 }
 0x41b   :  { %v267_v9 = vadd.f32 1.0, %v2605_v7  ;;  %v2607_v10 = vpop.eup %2606 }
 0x41c   :  { %v374_v11 = vadd.f32 1.0, %v2607_v10 }
 0x41d   :  { %2608 = vrcp.f32 %v267_v9 }
 0x41e   :  { %2610 = vrcp.f32 %v374_v11 }
 0x427   :  { %v2609_v13 = vpop.eup %2608 }
 0x428   :  { %v2611_v17 = vpop.eup %2610 }
 0x429   :  { %v378_v25 = vmul.f32 %v2611_v17, %v2868_v33 }
 0x488   :  { %v278_v14 = vpop.permute.xlu0 %277 }
 0x489   :  { %v280_v16 = vmul.f32 %v2609_v13, %v278_v14 }
 0x48b   :  { %282 = vrot.lane.b32.xlu1 %v280_v16, %s2728_s23 }
 0x48c   :  { %v381_v18 = vpop.permute.xlu1 %380  ;;  %v273_v21 = vpop.permute.xlu0 %272 }
 0x48d   :  { %v383_v20 = vmul.f32 %v2611_v17, %v381_v18  ;;  %v275_v22 = vmul.f32 %v2609_v13, %v273_v21 }
 0x48f   :  { %385 = vrot.lane.b32.xlu0 %v383_v20, %s2728_s23 }
 0x4fd   :  { %v283_v23 = vpop.permute.xlu1 %282 }
 0x4fe   :  { %v2960_v24 = vadd.f32 %v283_v23, %v275_v22  ;;  %v1894_v23 = vld [vmem:[%s3280_s0 + $0x18] sm:$0xff] }
 0x500   :  { %2612 = vtanh.f32 %v2960_v24 }
 0x501   :  { %v386_v26 = vpop.permute.xlu0 %385 }
 0x502   :  { %v2964_v27 = vadd.f32 %v386_v26, %v378_v25 }
 0x504   :  { %2614 = vtanh.f32 %v2964_v27 }
 0x50a   :  { %v2613_v28 = vpop.eup %2612 }
 0x50b   :  { %288 = vrot.lane.b32.xlu1 %v2613_v28, %s2729_s22 }
 0x50e   :  { %v2615_v29 = vpop.eup %2614 }
 0x50f   :  { %391 = vrot.lane.b32.xlu0 %v2615_v29, %s2729_s22 }
 0x57d   :  { %v289_v30 = vpop.permute.xlu1 %288 }
 0x57e   :  { %v291_v31 = vmul.f32 %v2609_v13, %v289_v30 }
 0x580   :  { %400 = vrot.lane.b32.xlu0 %v291_v31, %s2729_s22 }
 0x581   :  { %v392_v32 = vpop.permute.xlu0 %391 }
 0x582   :  { %v394_v34 = vmul.f32 %v2611_v17, %v392_v32 }
 0x584   :  { %396 = vrot.lane.b32.xlu1 %v394_v34, %s2728_s23 }
 0x588   :  { %503 = vrot.lane.b32.xlu1 %v394_v34, %s2729_s22 }
 0x5f2   :  { %v401_v33 = vpop.permute.xlu0 %400 }
 0x5f6   :  { %v397_v35 = vpop.permute.xlu1 %396 }
 0x5f7   :  { %v403_v36 = vsel %vm66_vm1, %v397_v35, %v401_v33 }
 0x5f8   :  { %2147 = vmatmul.mubr.msk.f32.vlgmr.msra.gmra.mrb[2].mxu1 %vm74_vm2, %v403_v36 }
 0x5f9   :  { %2450 = vmatpush3.bf16.msra.mxu1 %v2880_v37  ;;  %2184 = vmatprep.mubr.msk.f32.mxu1 %vm2726_vm0, %v2727_v4 }
 0x5fa   :  { %v504_v40 = vpop.permute.xlu1 %503  ;;  %2451 = vmatprep.subr.bf16.mxu1 %v2725_v1 }
 0x5fb   :  { %v506_v41 = vsel %vm66_vm1, %v1889_v38, %v504_v40 }
 0x5fc   :  { %2166 = vmatmul.mubr.msk.f32.vlgmr.msra.gmra.mrb[4].mxu0 %vm74_vm2, %v506_v41 }
 0x5fd   :  { %2453 = vmatpush3.bf16.msra.mxu1 %v2886_v39  ;;  %2462 = vmatpush3.bf16.msra.mxu0 %v2804_v5 }
 0x5fe   :  { %2454 = vmatprep.subr.bf16.mxu1 %v2725_v1  ;;  %2463 = vmatprep.subr.bf16.mxu0 %v2725_v1 }
 0x5ff   :  { %2203 = vmatprep.mubr.msk.f32.mxu0 %vm2726_vm0, %v2727_v4 }
 0x601   :  { %2456 = vmatpush3.bf16.msra.mxu1 %v2900_v44  ;;  %2465 = vmatpush3.bf16.msra.mxu0 %v2816_v8 }
 0x602   :  { %2457 = vmatprep.subr.bf16.mxu1 %v2725_v1  ;;  %2466 = vmatprep.subr.bf16.mxu0 %v2725_v1 }
 0x605   :  { %2459 = vmatpush3.bf16.msra.mxu1 %v2911_v47  ;;  %2468 = vmatpush3.bf16.msra.mxu0 %v2830_v12 }
 0x606   :  { %2469 = vmatprep.subr.bf16.mxu0 %v2725_v1  ;;  %2472 = vmatprep.subr.bf16.mxu1 %v2725_v1 }
 0x609   :  { %2471 = vmatpush3.bf16.msra.mxu0 %v2840_v15 }
 0x60a   :  { %2484 = vmatprep.subr.bf16.mxu0 %v2725_v1 }
 0x6cb   :  { %v473_v42 = vpop.f32.mrb[2].mxu1 }
 0x6cc   :  { %v474_v43 = vadd.f32 %v2948_v56, %v473_v42  ;;  %v2148_v45 = vpop.f32.mrb[3].mxu1 }
 0x6ce   :  { %2616 = vtanh.f32 %v474_v43  ;;  %v1888_v52 = vmul.f32 -1.442695, %v474_v43 }
 0x6cf   :  { %v576_v46 = vpop.f32.mrb[4].mxu0 }
 0x6d0   :  { %v577_v48 = vadd.f32 %v2863_v19, %v576_v46  ;;  %v2167_v49 = vpop.f32.mrb[5].mxu0 }
 0x6d2   :  { %2618 = vtanh.f32 %v577_v48  ;;  %v1891_v53 = vmul.f32 -1.442695, %v577_v48 }
 0x6d3   :  { %2620 = vpow2.f32 %v1888_v52 }
 0x6d4   :  { %2622 = vpow2.f32 %v1891_v53 }
 0x6d8   :  { %v2617_v50 = vpop.eup %2616 }
 0x6d9   :  { %486 = vrot.lane.b32.xlu0 %v2617_v50, %s2729_s22 }
 0x6dc   :  { %v2619_v51 = vpop.eup %2618 }
 0x6dd   :  { %589 = vrot.lane.b32.xlu1 %v2619_v51, %s2729_s22  ;;  %v2621_v54 = vpop.eup %2620 }
 0x6de   :  { %v480_v55 = vadd.f32 1.0, %v2621_v54  ;;  %v2623_v57 = vpop.eup %2622 }
 0x6df   :  { %v583_v58 = vadd.f32 1.0, %v2623_v57 }
 0x6e0   :  { %2624 = vrcp.f32 %v480_v55 }
 0x6e1   :  { %2626 = vrcp.f32 %v583_v58 }
 0x6ea   :  { %v2625_v59 = vpop.eup %2624 }
 0x6eb   :  { %v2627_v62 = vpop.eup %2626  ;;  %v484_v2 = vmul.f32 %v2625_v59, %v2960_v24 }
 0x6ec   :  { %v587_v7 = vmul.f32 %v2627_v62, %v2964_v27 }
 0x74b   :  { %v487_v60 = vpop.permute.xlu0 %486 }
 0x74c   :  { %v489_v61 = vmul.f32 %v2625_v59, %v487_v60 }
 0x74e   :  { %491 = vrot.lane.b32.xlu0 %v489_v61, %s2728_s23 }
 0x74f   :  { %v590_v63 = vpop.permute.xlu1 %589 }
 0x750   :  { %v592_v0 = vmul.f32 %v2627_v62, %v590_v63 }
 0x752   :  { %594 = vrot.lane.b32.xlu1 %v592_v0, %s2728_s23 }
 0x7c0   :  { %v492_v3 = vpop.permute.xlu0 %491 }
 0x7c1   :  { %v3006_v6 = vadd.f32 %v492_v3, %v484_v2  ;;  %v1899_v3 = vld [vmem:[%s3280_s0 + $0x20] sm:$0xff] }
 0x7c3   :  { %2628 = vtanh.f32 %v3006_v6 }
 0x7c4   :  { %v595_v9 = vpop.permute.xlu1 %594 }
 0x7c5   :  { %v3010_v10 = vadd.f32 %v595_v9, %v587_v7 }
 0x7c7   :  { %2630 = vtanh.f32 %v3010_v10 }
 0x7cd   :  { %v2629_v11 = vpop.eup %2628 }
 0x7ce   :  { %497 = vrot.lane.b32.xlu0 %v2629_v11, %s2729_s22 }
 0x7d1   :  { %v2631_v13 = vpop.eup %2630 }
 0x7d2   :  { %600 = vrot.lane.b32.xlu1 %v2631_v13, %s2729_s22 }
 0x840   :  { %v498_v14 = vpop.permute.xlu0 %497 }
 0x841   :  { %v500_v16 = vmul.f32 %v2625_v59, %v498_v14 }
 0x843   :  { %609 = vrot.lane.b32.xlu1 %v500_v16, %s2729_s22 }
 0x844   :  { %v601_v17 = vpop.permute.xlu1 %600 }
 0x845   :  { %v603_v18 = vmul.f32 %v2627_v62, %v601_v17 }
 0x847   :  { %605 = vrot.lane.b32.xlu0 %v603_v18, %s2728_s23 }
 0x84b   :  { %712 = vrot.lane.b32.xlu0 %v603_v18, %s2729_s22 }
 0x8b5   :  { %v610_v20 = vpop.permute.xlu1 %609 }
 0x8b9   :  { %v606_v21 = vpop.permute.xlu0 %605 }
 0x8ba   :  { %v612_v22 = vsel %vm66_vm1, %v606_v21, %v610_v20 }
 0x8bb   :  { %2185 = vmatmul.mubr.msk.f32.vlgmr.msra.gmra.mrb[4].mxu1 %vm74_vm2, %v612_v22 }
 0x8bc   :  { %2474 = vmatpush3.bf16.msra.mxu1 %v2880_v37  ;;  %2222 = vmatprep.mubr.msk.f32.mxu1 %vm2726_vm0, %v2727_v4 }
 0x8bd   :  { %v713_v24 = vpop.permute.xlu0 %712  ;;  %2475 = vmatprep.subr.bf16.mxu1 %v2725_v1 }
 0x8be   :  { %v715_v25 = vsel %vm66_vm1, %v1894_v23, %v713_v24 }
 0x8bf   :  { %2204 = vmatmul.mubr.msk.f32.vlgmr.msra.gmra.mrb[6].mxu0 %vm74_vm2, %v715_v25 }
 0x8c0   :  { %2477 = vmatpush3.bf16.msra.mxu1 %v2886_v39  ;;  %2486 = vmatpush3.bf16.msra.mxu0 %v2804_v5 }
 0x8c1   :  { %2478 = vmatprep.subr.bf16.mxu1 %v2725_v1  ;;  %2487 = vmatprep.subr.bf16.mxu0 %v2725_v1 }
 0x8c2   :  { %2241 = vmatprep.mubr.msk.f32.mxu0 %vm2726_vm0, %v2727_v4 }
 0x8c4   :  { %2480 = vmatpush3.bf16.msra.mxu1 %v2900_v44  ;;  %2489 = vmatpush3.bf16.msra.mxu0 %v2816_v8 }
 0x8c5   :  { %2481 = vmatprep.subr.bf16.mxu1 %v2725_v1  ;;  %2490 = vmatprep.subr.bf16.mxu0 %v2725_v1 }
 0x8c8   :  { %2483 = vmatpush3.bf16.msra.mxu1 %v2911_v47  ;;  %2492 = vmatpush3.bf16.msra.mxu0 %v2830_v12 }
 0x8c9   :  { %2493 = vmatprep.subr.bf16.mxu0 %v2725_v1  ;;  %2496 = vmatprep.subr.bf16.mxu1 %v2725_v1 }
 0x8cc   :  { %2495 = vmatpush3.bf16.msra.mxu0 %v2840_v15 }
 0x8cd   :  { %2508 = vmatprep.subr.bf16.mxu0 %v2725_v1 }
 0x98e   :  { %v682_v26 = vpop.f32.mrb[4].mxu1 }
 0x98f   :  { %v683_v27 = vadd.f32 %v2948_v56, %v682_v26  ;;  %v2186_v28 = vpop.f32.mrb[5].mxu1 }
 0x991   :  { %2632 = vtanh.f32 %v683_v27  ;;  %v1893_v33 = vmul.f32 -1.442695, %v683_v27 }
 0x992   :  { %v785_v29 = vpop.f32.mrb[6].mxu0 }
 0x993   :  { %v786_v30 = vadd.f32 %v2863_v19, %v785_v29  ;;  %v2205_v31 = vpop.f32.mrb[7].mxu0 }
 0x995   :  { %2634 = vtanh.f32 %v786_v30  ;;  %v1896_v35 = vmul.f32 -1.442695, %v786_v30 }
 0x996   :  { %2636 = vpow2.f32 %v1893_v33 }
 0x997   :  { %2638 = vpow2.f32 %v1896_v35 }
 0x99b   :  { %v2633_v32 = vpop.eup %2632 }
 0x99c   :  { %695 = vrot.lane.b32.xlu1 %v2633_v32, %s2729_s22 }
 0x99f   :  { %v2635_v34 = vpop.eup %2634 }
 0x9a0   :  { %798 = vrot.lane.b32.xlu0 %v2635_v34, %s2729_s22  ;;  %v2637_v36 = vpop.eup %2636 }
 0x9a1   :  { %v689_v38 = vadd.f32 1.0, %v2637_v36  ;;  %v2639_v40 = vpop.eup %2638 }
 0x9a2   :  { %v792_v41 = vadd.f32 1.0, %v2639_v40 }
 0x9a3   :  { %2640 = vrcp.f32 %v689_v38 }
 0x9a4   :  { %2642 = vrcp.f32 %v792_v41 }
 0x9ad   :  { %v2641_v42 = vpop.eup %2640 }
 0x9ae   :  { %v2643_v46 = vpop.eup %2642  ;;  %v693_v50 = vmul.f32 %v2641_v42, %v3006_v6 }
 0x9af   :  { %v796_v53 = vmul.f32 %v2643_v46, %v3010_v10 }
 0xa0e   :  { %v696_v43 = vpop.permute.xlu1 %695 }
 0xa0f   :  { %v698_v45 = vmul.f32 %v2641_v42, %v696_v43 }
 0xa11   :  { %700 = vrot.lane.b32.xlu1 %v698_v45, %s2728_s23 }
 0xa12   :  { %v799_v48 = vpop.permute.xlu0 %798 }
 0xa13   :  { %v801_v49 = vmul.f32 %v2643_v46, %v799_v48 }
 0xa15   :  { %803 = vrot.lane.b32.xlu0 %v801_v49, %s2728_s23 }
 0xa83   :  { %v701_v51 = vpop.permute.xlu1 %700 }
 0xa84   :  { %v3052_v52 = vadd.f32 %v701_v51, %v693_v50  ;;  %v1904_v51 = vld [vmem:[%s3280_s0 + $0x28] sm:$0xff] }
 0xa86   :  { %2644 = vtanh.f32 %v3052_v52 }
 0xa87   :  { %v804_v54 = vpop.permute.xlu0 %803 }
 0xa88   :  { %v3056_v55 = vadd.f32 %v804_v54, %v796_v53 }
 0xa8a   :  { %2646 = vtanh.f32 %v3056_v55 }
 0xa90   :  { %v2645_v57 = vpop.eup %2644 }
 0xa91   :  { %706 = vrot.lane.b32.xlu1 %v2645_v57, %s2729_s22 }
 0xa94   :  { %v2647_v58 = vpop.eup %2646 }
 0xa95   :  { %809 = vrot.lane.b32.xlu0 %v2647_v58, %s2729_s22 }
 0xb03   :  { %v707_v59 = vpop.permute.xlu1 %706 }
 0xb04   :  { %v709_v60 = vmul.f32 %v2641_v42, %v707_v59 }
 0xb06   :  { %818 = vrot.lane.b32.xlu0 %v709_v60, %s2729_s22 }
 0xb07   :  { %v810_v61 = vpop.permute.xlu0 %809 }
 0xb08   :  { %v812_v62 = vmul.f32 %v2643_v46, %v810_v61 }
 0xb0a   :  { %814 = vrot.lane.b32.xlu1 %v812_v62, %s2728_s23 }
 0xb0e   :  { %921 = vrot.lane.b32.xlu1 %v812_v62, %s2729_s22 }
 0xb78   :  { %v819_v63 = vpop.permute.xlu0 %818 }
 0xb7c   :  { %v815_v0 = vpop.permute.xlu1 %814 }
 0xb7d   :  { %v821_v2 = vsel %vm66_vm1, %v815_v0, %v819_v63 }
 0xb7e   :  { %2223 = vmatmul.mubr.msk.f32.vlgmr.msra.gmra.mrb[6].mxu1 %vm74_vm2, %v821_v2 }
 0xb7f   :  { %2498 = vmatpush3.bf16.msra.mxu1 %v2880_v37  ;;  %2260 = vmatprep.mubr.msk.f32.mxu1 %vm2726_vm0, %v2727_v4 }
 0xb80   :  { %v922_v6 = vpop.permute.xlu1 %921  ;;  %2499 = vmatprep.subr.bf16.mxu1 %v2725_v1 }
 0xb81   :  { %v924_v7 = vsel %vm66_vm1, %v1899_v3, %v922_v6 }
 0xb82   :  { %2242 = vmatmul.mubr.msk.f32.vlgmr.msra.gmra.mrb[8].mxu0 %vm74_vm2, %v924_v7 }
 0xb83   :  { %2501 = vmatpush3.bf16.msra.mxu1 %v2886_v39  ;;  %2510 = vmatpush3.bf16.msra.mxu0 %v2804_v5 }
 0xb84   :  { %2502 = vmatprep.subr.bf16.mxu1 %v2725_v1  ;;  %2511 = vmatprep.subr.bf16.mxu0 %v2725_v1 }
 0xb85   :  { %2279 = vmatprep.mubr.msk.f32.mxu0 %vm2726_vm0, %v2727_v4 }
 0xb87   :  { %2504 = vmatpush3.bf16.msra.mxu1 %v2900_v44  ;;  %2513 = vmatpush3.bf16.msra.mxu0 %v2816_v8 }
 0xb88   :  { %2505 = vmatprep.subr.bf16.mxu1 %v2725_v1  ;;  %2514 = vmatprep.subr.bf16.mxu0 %v2725_v1 }
 0xb8b   :  { %2507 = vmatpush3.bf16.msra.mxu1 %v2911_v47  ;;  %2516 = vmatpush3.bf16.msra.mxu0 %v2830_v12 }
 0xb8c   :  { %2517 = vmatprep.subr.bf16.mxu0 %v2725_v1  ;;  %2520 = vmatprep.subr.bf16.mxu1 %v2725_v1 }
 0xb8f   :  { %2519 = vmatpush3.bf16.msra.mxu0 %v2840_v15 }
 0xb90   :  { %2532 = vmatprep.subr.bf16.mxu0 %v2725_v1 }
 0xc51   :  { %v891_v9 = vpop.f32.mrb[6].mxu1 }
 0xc52   :  { %v892_v10 = vadd.f32 %v2948_v56, %v891_v9  ;;  %v2224_v11 = vpop.f32.mrb[7].mxu1 }
 0xc54   :  { %2648 = vtanh.f32 %v892_v10  ;;  %v1898_v20 = vmul.f32 -1.442695, %v892_v10 }
 0xc55   :  { %v994_v13 = vpop.f32.mrb[8].mxu0 }
 0xc56   :  { %v995_v14 = vadd.f32 %v2863_v19, %v994_v13  ;;  %v2243_v16 = vpop.f32.mrb[9].mxu0 }
 0xc58   :  { %2650 = vtanh.f32 %v995_v14  ;;  %v1901_v21 = vmul.f32 -1.442695, %v995_v14 }
 0xc59   :  { %2652 = vpow2.f32 %v1898_v20 }
 0xc5a   :  { %2654 = vpow2.f32 %v1901_v21 }
 0xc5e   :  { %v2649_v17 = vpop.eup %2648 }
 0xc5f   :  { %904 = vrot.lane.b32.xlu0 %v2649_v17, %s2729_s22 }
 0xc62   :  { %v2651_v18 = vpop.eup %2650 }
 0xc63   :  { %1007 = vrot.lane.b32.xlu1 %v2651_v18, %s2729_s22  ;;  %v2653_v22 = vpop.eup %2652 }
 0xc64   :  { %v898_v23 = vadd.f32 1.0, %v2653_v22  ;;  %v2655_v24 = vpop.eup %2654 }
 0xc65   :  { %v1001_v25 = vadd.f32 1.0, %v2655_v24 }
 0xc66   :  { %2656 = vrcp.f32 %v898_v23 }
 0xc67   :  { %2658 = vrcp.f32 %v1001_v25 }
 0xc70   :  { %v2657_v26 = vpop.eup %2656 }
 0xc71   :  { %v2659_v29 = vpop.eup %2658  ;;  %v902_v32 = vmul.f32 %v2657_v26, %v3052_v52 }
 0xc72   :  { %v1005_v35 = vmul.f32 %v2659_v29, %v3056_v55 }
 0xcd1   :  { %v905_v27 = vpop.permute.xlu0 %904 }
 0xcd2   :  { %v907_v28 = vmul.f32 %v2657_v26, %v905_v27 }
 0xcd4   :  { %909 = vrot.lane.b32.xlu0 %v907_v28, %s2728_s23 }
 0xcd5   :  { %v1008_v30 = vpop.permute.xlu1 %1007 }
 0xcd6   :  { %v1010_v31 = vmul.f32 %v2659_v29, %v1008_v30 }
 0xcd8   :  { %1012 = vrot.lane.b32.xlu1 %v1010_v31, %s2728_s23 }
 0xd46   :  { %v910_v34 = vpop.permute.xlu0 %909 }
 0xd47   :  { %v3098_v33 = vadd.f32 %v910_v34, %v902_v32  ;;  %v1909_v34 = vld [vmem:[%s3280_s0 + $0x30] sm:$0xff] }
 0xd49   :  { %2660 = vtanh.f32 %v3098_v33 }
 0xd4a   :  { %v1013_v36 = vpop.permute.xlu1 %1012 }
 0xd4b   :  { %v3102_v38 = vadd.f32 %v1013_v36, %v1005_v35 }
 0xd4d   :  { %2662 = vtanh.f32 %v3102_v38 }
 0xd53   :  { %v2661_v40 = vpop.eup %2660 }
 0xd54   :  { %915 = vrot.lane.b32.xlu0 %v2661_v40, %s2729_s22 }
 0xd57   :  { %v2663_v41 = vpop.eup %2662 }
 0xd58   :  { %1018 = vrot.lane.b32.xlu1 %v2663_v41, %s2729_s22 }
 0xdc6   :  { %v916_v42 = vpop.permute.xlu0 %915 }
 0xdc7   :  { %v918_v43 = vmul.f32 %v2657_v26, %v916_v42 }
 0xdc9   :  { %1027 = vrot.lane.b32.xlu1 %v918_v43, %s2729_s22 }
 0xdca   :  { %v1019_v45 = vpop.permute.xlu1 %1018 }
 0xdcb   :  { %v1021_v46 = vmul.f32 %v2659_v29, %v1019_v45 }
 0xdcd   :  { %1023 = vrot.lane.b32.xlu0 %v1021_v46, %s2728_s23 }
 0xdd1   :  { %1130 = vrot.lane.b32.xlu0 %v1021_v46, %s2729_s22 }
 0xe3b   :  { %v1028_v48 = vpop.permute.xlu1 %1027 }
 0xe3f   :  { %v1024_v49 = vpop.permute.xlu0 %1023 }
 0xe40   :  { %v1030_v50 = vsel %vm66_vm1, %v1024_v49, %v1028_v48 }
 0xe41   :  { %2261 = vmatmul.mubr.msk.f32.vlgmr.msra.gmra.mrb[8].mxu1 %vm74_vm2, %v1030_v50 }
 0xe42   :  { %2522 = vmatpush3.bf16.msra.mxu1 %v2880_v37  ;;  %2298 = vmatprep.mubr.msk.f32.mxu1 %vm2726_vm0, %v2727_v4 }
 0xe43   :  { %v1131_v52 = vpop.permute.xlu0 %1130  ;;  %2523 = vmatprep.subr.bf16.mxu1 %v2725_v1 }
 0xe44   :  { %v1133_v53 = vsel %vm66_vm1, %v1904_v51, %v1131_v52 }
 0xe45   :  { %2280 = vmatmul.mubr.msk.f32.vlgmr.msra.gmra.mrb[10].mxu0 %vm74_vm2, %v1133_v53 }
 0xe46   :  { %2525 = vmatpush3.bf16.msra.mxu1 %v2886_v39  ;;  %2534 = vmatpush3.bf16.msra.mxu0 %v2804_v5 }
 0xe47   :  { %2526 = vmatprep.subr.bf16.mxu1 %v2725_v1  ;;  %2535 = vmatprep.subr.bf16.mxu0 %v2725_v1 }
 0xe48   :  { %2317 = vmatprep.mubr.msk.f32.mxu0 %vm2726_vm0, %v2727_v4 }
 0xe4a   :  { %2528 = vmatpush3.bf16.msra.mxu1 %v2900_v44  ;;  %2537 = vmatpush3.bf16.msra.mxu0 %v2816_v8 }
 0xe4b   :  { %2529 = vmatprep.subr.bf16.mxu1 %v2725_v1  ;;  %2538 = vmatprep.subr.bf16.mxu0 %v2725_v1 }
 0xe4e   :  { %2531 = vmatpush3.bf16.msra.mxu1 %v2911_v47  ;;  %2540 = vmatpush3.bf16.msra.mxu0 %v2830_v12 }
 0xe4f   :  { %2541 = vmatprep.subr.bf16.mxu0 %v2725_v1  ;;  %2544 = vmatprep.subr.bf16.mxu1 %v2725_v1 }
 0xe52   :  { %2543 = vmatpush3.bf16.msra.mxu0 %v2840_v15 }
 0xe53   :  { %2556 = vmatprep.subr.bf16.mxu0 %v2725_v1 }
 0xf14   :  { %v1100_v54 = vpop.f32.mrb[8].mxu1 }
 0xf15   :  { %v1101_v55 = vadd.f32 %v2948_v56, %v1100_v54  ;;  %v2262_v57 = vpop.f32.mrb[9].mxu1 }
 0xf17   :  { %2664 = vtanh.f32 %v1101_v55  ;;  %v1903_v63 = vmul.f32 -1.442695, %v1101_v55 }
 0xf18   :  { %v1203_v58 = vpop.f32.mrb[10].mxu0 }
 0xf19   :  { %v1204_v59 = vadd.f32 %v2863_v19, %v1203_v58  ;;  %v2281_v60 = vpop.f32.mrb[11].mxu0 }
 0xf1b   :  { %2666 = vtanh.f32 %v1204_v59  ;;  %v1906_v0 = vmul.f32 -1.442695, %v1204_v59 }
 0xf1c   :  { %2668 = vpow2.f32 %v1903_v63 }
 0xf1d   :  { %2670 = vpow2.f32 %v1906_v0 }
 0xf21   :  { %v2665_v61 = vpop.eup %2664 }
 0xf22   :  { %1113 = vrot.lane.b32.xlu1 %v2665_v61, %s2729_s22 }
 0xf25   :  { %v2667_v62 = vpop.eup %2666 }
 0xf26   :  { %1216 = vrot.lane.b32.xlu0 %v2667_v62, %s2729_s22  ;;  %v2669_v2 = vpop.eup %2668 }
 0xf27   :  { %v1107_v3 = vadd.f32 1.0, %v2669_v2  ;;  %v2671_v6 = vpop.eup %2670 }
 0xf28   :  { %v1210_v7 = vadd.f32 1.0, %v2671_v6 }
 0xf29   :  { %2672 = vrcp.f32 %v1107_v3 }
 0xf2a   :  { %2674 = vrcp.f32 %v1210_v7 }
 0xf33   :  { %v2673_v9 = vpop.eup %2672 }
 0xf34   :  { %v2675_v13 = vpop.eup %2674  ;;  %v1111_v17 = vmul.f32 %v2673_v9, %v3098_v33 }
 0xf35   :  { %v1214_v21 = vmul.f32 %v2675_v13, %v3102_v38 }
 0xf94   :  { %v1114_v10 = vpop.permute.xlu1 %1113 }
 0xf95   :  { %v1116_v11 = vmul.f32 %v2673_v9, %v1114_v10 }
 0xf97   :  { %1118 = vrot.lane.b32.xlu1 %v1116_v11, %s2728_s23  ;;  %v1914_v11 = vld [vmem:[%s3280_s0 + $0x38] sm:$0xff] }
 0xf98   :  { %v1217_v14 = vpop.permute.xlu0 %1216 }
 0xf99   :  { %v1219_v16 = vmul.f32 %v2675_v13, %v1217_v14 }
 0xf9b   :  { %1221 = vrot.lane.b32.xlu0 %v1219_v16, %s2728_s23 }
0x1009   :  { %v1119_v18 = vpop.permute.xlu1 %1118 }
0x100a   :  { %v3144_v20 = vadd.f32 %v1119_v18, %v1111_v17 }
0x100c   :  { %2676 = vtanh.f32 %v3144_v20 }
0x100d   :  { %v1222_v22 = vpop.permute.xlu0 %1221 }
0x100e   :  { %v3148_v23 = vadd.f32 %v1222_v22, %v1214_v21 }
0x1010   :  { %2678 = vtanh.f32 %v3148_v23 }
0x1016   :  { %v2677_v24 = vpop.eup %2676 }
0x1017   :  { %1124 = vrot.lane.b32.xlu1 %v2677_v24, %s2729_s22 }
0x101a   :  { %v2679_v25 = vpop.eup %2678 }
0x101b   :  { %1227 = vrot.lane.b32.xlu0 %v2679_v25, %s2729_s22 }
0x1089   :  { %v1125_v26 = vpop.permute.xlu1 %1124 }
0x108a   :  { %v1127_v27 = vmul.f32 %v2673_v9, %v1125_v26 }
0x108c   :  { %1236 = vrot.lane.b32.xlu0 %v1127_v27, %s2729_s22 }
0x108d   :  { %v1228_v28 = vpop.permute.xlu0 %1227 }
0x108e   :  { %v1230_v29 = vmul.f32 %v2675_v13, %v1228_v28 }
0x1090   :  { %1232 = vrot.lane.b32.xlu1 %v1230_v29, %s2728_s23 }
0x1094   :  { %1339 = vrot.lane.b32.xlu1 %v1230_v29, %s2729_s22 }
0x10fe   :  { %v1237_v30 = vpop.permute.xlu0 %1236 }
0x1102   :  { %v1233_v31 = vpop.permute.xlu1 %1232 }
0x1103   :  { %v1239_v32 = vsel %vm66_vm1, %v1233_v31, %v1237_v30 }
0x1104   :  { %2299 = vmatmul.mubr.msk.f32.vlgmr.msra.gmra.mrb[10].mxu1 %vm74_vm2, %v1239_v32 }
0x1105   :  { %2546 = vmatpush3.bf16.msra.mxu1 %v2880_v37  ;;  %2336 = vmatprep.mubr.msk.f32.mxu1 %vm2726_vm0, %v2727_v4 }
0x1106   :  { %v1340_v33 = vpop.permute.xlu1 %1339  ;;  %2547 = vmatprep.subr.bf16.mxu1 %v2725_v1 }
0x1107   :  { %v1342_v35 = vsel %vm66_vm1, %v1909_v34, %v1340_v33 }
0x1108   :  { %2318 = vmatmul.mubr.msk.f32.vlgmr.msra.gmra.mrb[12].mxu0 %vm74_vm2, %v1342_v35 }
0x1109   :  { %2549 = vmatpush3.bf16.msra.mxu1 %v2886_v39  ;;  %2558 = vmatpush3.bf16.msra.mxu0 %v2804_v5 }
0x110a   :  { %2550 = vmatprep.subr.bf16.mxu1 %v2725_v1  ;;  %2559 = vmatprep.subr.bf16.mxu0 %v2725_v1 }
0x110b   :  { %2355 = vmatprep.mubr.msk.f32.mxu0 %vm2726_vm0, %v2727_v4 }
0x110d   :  { %2552 = vmatpush3.bf16.msra.mxu1 %v2900_v44  ;;  %2561 = vmatpush3.bf16.msra.mxu0 %v2816_v8 }
0x110e   :  { %2553 = vmatprep.subr.bf16.mxu1 %v2725_v1  ;;  %2562 = vmatprep.subr.bf16.mxu0 %v2725_v1 }
0x1111   :  { %2555 = vmatpush3.bf16.msra.mxu1 %v2911_v47  ;;  %2564 = vmatpush3.bf16.msra.mxu0 %v2830_v12 }
0x1112   :  { %2565 = vmatprep.subr.bf16.mxu0 %v2725_v1  ;;  %2568 = vmatprep.subr.bf16.mxu1 %v2725_v1 }
0x1115   :  { %2567 = vmatpush3.bf16.msra.mxu0 %v2840_v15 }
0x1116   :  { %2580 = vmatprep.subr.bf16.mxu0 %v2725_v1 }
0x11d7   :  { %v1309_v5 = vpop.f32.mrb[10].mxu1 }
0x11d8   :  { %v1310_v36 = vadd.f32 %v2948_v56, %v1309_v5  ;;  %v2300_v8 = vpop.f32.mrb[11].mxu1 }
0x11da   :  { %2680 = vtanh.f32 %v1310_v36  ;;  %v1908_v43 = vmul.f32 -1.442695, %v1310_v36 }
0x11db   :  { %v1412_v38 = vpop.f32.mrb[12].mxu0 }
0x11dc   :  { %v1413_v40 = vadd.f32 %v2863_v19, %v1412_v38  ;;  %v2319_v41 = vpop.f32.mrb[13].mxu0 }
0x11de   :  { %2682 = vtanh.f32 %v1413_v40  ;;  %v1911_v15 = vmul.f32 -1.442695, %v1413_v40 }
0x11df   :  { %2684 = vpow2.f32 %v1908_v43 }
0x11e0   :  { %2686 = vpow2.f32 %v1911_v15 }
0x11e4   :  { %v2681_v42 = vpop.eup %2680 }
0x11e5   :  { %1322 = vrot.lane.b32.xlu0 %v2681_v42, %s2729_s22 }
0x11e8   :  { %v2683_v12 = vpop.eup %2682 }
0x11e9   :  { %1425 = vrot.lane.b32.xlu1 %v2683_v12, %s2729_s22  ;;  %v2685_v45 = vpop.eup %2684 }
0x11ea   :  { %v1316_v46 = vadd.f32 1.0, %v2685_v45  ;;  %v2687_v48 = vpop.eup %2686 }
0x11eb   :  { %v1419_v49 = vadd.f32 1.0, %v2687_v48 }
0x11ec   :  { %2688 = vrcp.f32 %v1316_v46 }
0x11ed   :  { %2690 = vrcp.f32 %v1419_v49 }
0x11f6   :  { %v2689_v50 = vpop.eup %2688 }
0x11f7   :  { %v2691_v52 = vpop.eup %2690  ;;  %v1320_v55 = vmul.f32 %v2689_v50, %v3144_v20 }
0x11f8   :  { %v1423_v59 = vmul.f32 %v2691_v52, %v3148_v23 }
0x1257   :  { %v1323_v19 = vpop.permute.xlu0 %1322 }
0x1258   :  { %v1325_v51 = vmul.f32 %v2689_v50, %v1323_v19 }
0x125a   :  { %1327 = vrot.lane.b32.xlu0 %v1325_v51, %s2728_s23 }
0x125b   :  { %v1426_v53 = vpop.permute.xlu1 %1425 }
0x125c   :  { %v1428_v54 = vmul.f32 %v2691_v52, %v1426_v53 }
0x125e   :  { %1430 = vrot.lane.b32.xlu1 %v1428_v54, %s2728_s23 }
0x12cc   :  { %v1328_v57 = vpop.permute.xlu0 %1327 }
0x12cd   :  { %v3190_v58 = vadd.f32 %v1328_v57, %v1320_v55 }
0x12cf   :  { %2692 = vtanh.f32 %v3190_v58 }
0x12d0   :  { %v1431_v60 = vpop.permute.xlu1 %1430 }
0x12d1   :  { %v3194_v61 = vadd.f32 %v1431_v60, %v1423_v59 }
0x12d3   :  { %2694 = vtanh.f32 %v3194_v61 }
0x12d9   :  { %v2693_v62 = vpop.eup %2692 }
0x12da   :  { %1333 = vrot.lane.b32.xlu0 %v2693_v62, %s2729_s22  ;;  %v1775_v62 = vld [vmem:[%s3285_s7 + $0x10] sm:$0xff] }
0x12dd   :  { %v2695_v63 = vpop.eup %2694 }
0x12de   :  { %1436 = vrot.lane.b32.xlu1 %v2695_v63, %s2729_s22 }
0x134c   :  { %v1334_v0 = vpop.permute.xlu0 %1333 }
0x134d   :  { %v1336_v2 = vmul.f32 %v2689_v50, %v1334_v0  ;;  %v1776_v0 = vld [vmem:[%s3285_s7 + $0x18] sm:$0xff] }
0x134f   :  { %1445 = vrot.lane.b32.xlu1 %v1336_v2, %s2729_s22  ;;  %v2584_v2 = vpack.c.bf16 %v1776_v0, %v1775_v62 }
0x1350   :  { %v1437_v3 = vpop.permute.xlu1 %1436 }
0x1351   :  { %v1439_v6 = vmul.f32 %v2691_v52, %v1437_v3 }
0x1353   :  { %1441 = vrot.lane.b32.xlu0 %v1439_v6, %s2728_s23 }
0x1357   :  { %1548 = vrot.lane.b32.xlu0 %v1439_v6, %s2729_s22  ;;  %v17_v6 = vstv %s3286_s8 }
0x1358   :  { %18 = vst [vmem:[#allocation2] sm:$0x1] %v17_v6 }
0x13c1   :  { %v1446_v7 = vpop.permute.xlu1 %1445 }
0x13c5   :  { %v1442_v9 = vpop.permute.xlu0 %1441 }
0x13c6   :  { %v1448_v10 = vsel %vm66_vm1, %v1442_v9, %v1446_v7 }
0x13c7   :  { %2337 = vmatmul.mubr.msk.f32.vlgmr.msra.gmra.mrb[12].mxu1 %vm74_vm2, %v1448_v10 }
0x13c8   :  { %2570 = vmatpush3.bf16.msra.mxu1 %v2880_v37  ;;  %2374 = vmatprep.mubr.msk.f32.mxu1 %vm2726_vm0, %v2727_v4 }
0x13c9   :  { %v1549_v13 = vpop.permute.xlu0 %1548  ;;  %2571 = vmatprep.subr.bf16.mxu1 %v2725_v1 }
0x13ca   :  { %v1551_v14 = vsel %vm66_vm1, %v1914_v11, %v1549_v13  ;;  %v1921_v13 = vld [vmem:[#allocation2] ss:$0 sm:$0xff] }
0x13cb   :  { %2356 = vmatmul.mubr.msk.f32.vlgmr.msra.gmra.mrb[14].mxu0 %vm74_vm2, %v1551_v14 }
0x13cc   :  { %2573 = vmatpush3.bf16.msra.mxu1 %v2886_v39  ;;  %2385 = vmatprep.mubr.msk.f32.mxu0 %vm2726_vm0, %v2727_v4  ;;  %v2724_v39 = vld [vmem:[%s3281_s4] ss:$0 sm:$0xff] }
0x13cd   :  { %2574 = vmatprep.subr.bf16.mxu1 %v2725_v1 }
0x13d0   :  { %2576 = vmatpush3.bf16.msra.mxu1 %v2900_v44 }
0x13d1   :  { %2577 = vmatprep.subr.bf16.mxu1 %v2725_v1 }
0x13d4   :  { %2579 = vmatpush3.bf16.msra.mxu1 %v2911_v47 }
0x149a   :  { %v1518_v37 = vpop.f32.mrb[12].mxu1 }
0x149b   :  { %v1519_v16 = vadd.f32 %v2948_v56, %v1518_v37  ;;  %v2338_v17 = vpop.f32.mrb[13].mxu1 }
0x149d   :  { %2696 = vtanh.f32 %v1519_v16  ;;  %v1913_v47 = vmul.f32 -1.442695, %v1519_v16 }
0x149e   :  { %v1621_v18 = vpop.f32.mrb[14].mxu0 }
0x149f   :  { %v1622_v20 = vadd.f32 %v2724_v39, %v1621_v18  ;;  %v2357_v4 = vpop.f32.mrb[15].mxu0 }
0x14a1   :  { %2698 = vtanh.f32 %v1622_v20  ;;  %v1916_v22 = vmul.f32 -1.442695, %v1622_v20 }
0x14a2   :  { %2700 = vpow2.f32 %v1913_v47 }
0x14a3   :  { %2702 = vpow2.f32 %v1916_v22 }
0x14a7   :  { %v2697_v21 = vpop.eup %2696 }
0x14a8   :  { %1531 = vrot.lane.b32.xlu1 %v2697_v21, %s2729_s22 }
0x14ab   :  { %v2699_v44 = vpop.eup %2698 }
0x14ac   :  { %1634 = vrot.lane.b32.xlu0 %v2699_v44, %s2729_s22  ;;  %v2701_v23 = vpop.eup %2700 }
0x14ad   :  { %v1525_v24 = vadd.f32 1.0, %v2701_v23  ;;  %v2703_v25 = vpop.eup %2702 }
0x14ae   :  { %v1628_v26 = vadd.f32 1.0, %v2703_v25 }
0x14af   :  { %2704 = vrcp.f32 %v1525_v24 }
0x14b0   :  { %2706 = vrcp.f32 %v1628_v26 }
0x14b9   :  { %v2705_v27 = vpop.eup %2704 }
0x14ba   :  { %v2707_v30 = vpop.eup %2706  ;;  %v1529_v34 = vmul.f32 %v2705_v27, %v3190_v58 }
0x14bb   :  { %v1632_v5 = vmul.f32 %v2707_v30, %v3194_v61  ;;  %v1774_v61 = vld [vmem:[%s3285_s7 + $0x8] sm:$0xff] }
0x151a   :  { %v1532_v28 = vpop.permute.xlu1 %1531 }
0x151b   :  { %v1534_v29 = vmul.f32 %v2705_v27, %v1532_v28 }
0x151d   :  { %1536 = vrot.lane.b32.xlu1 %v1534_v29, %s2728_s23 }
0x151e   :  { %v1635_v31 = vpop.permute.xlu0 %1634 }
0x151f   :  { %v1637_v32 = vmul.f32 %v2707_v30, %v1635_v31 }
0x1521   :  { %1639 = vrot.lane.b32.xlu0 %v1637_v32, %s2728_s23 }
0x158f   :  { %v1537_v33 = vpop.permute.xlu1 %1536 }
0x1590   :  { %v1539_v35 = vadd.f32 %v1537_v33, %v1529_v34 }
0x1592   :  { %2708 = vtanh.f32 %v1539_v35 }
0x1593   :  { %v1640_v36 = vpop.permute.xlu0 %1639 }
0x1594   :  { %v1642_v8 = vadd.f32 %v1640_v36, %v1632_v5 }
0x1596   :  { %2710 = vtanh.f32 %v1642_v8 }
0x159c   :  { %v2709_v38 = vpop.eup %2708 }
0x159d   :  { %1542 = vrot.lane.b32.xlu1 %v2709_v38, %s2729_s22 }
0x15a0   :  { %v2711_v40 = vpop.eup %2710 }
0x15a1   :  { %1645 = vrot.lane.b32.xlu0 %v2711_v40, %s2729_s22 }
0x160f   :  { %v1543_v41 = vpop.permute.xlu1 %1542 }
0x1610   :  { %v1545_v42 = vmul.f32 %v2705_v27, %v1543_v41 }
0x1612   :  { %1654 = vrot.lane.b32.xlu0 %v1545_v42, %s2729_s22 }
0x1613   :  { %v1646_v12 = vpop.permute.xlu0 %1645 }
0x1614   :  { %v1648_v43 = vmul.f32 %v2707_v30, %v1646_v12 }
0x1616   :  { %1650 = vrot.lane.b32.xlu1 %v1648_v43, %s2728_s23 }
0x1684   :  { %v1655_v15 = vpop.permute.xlu0 %1654 }
0x1688   :  { %v1651_v45 = vpop.permute.xlu1 %1650 }
0x1689   :  { %v1657_v46 = vsel %vm66_vm1, %v1651_v45, %v1655_v15  ;;  %1755 = vst.msk [vmem:[%s3284_s10] sm:$0xff] %vm66_vm1, %v1651_v45 }
0x168a   :  { %2375 = vmatmul.mubr.msk.f32.vlgmr.msra.gmra.mrb[14].mxu1 %vm74_vm2, %v1657_v46 }
0x175d   :  { %v1727_v48 = vpop.f32.mrb[14].mxu1 }
0x175e   :  { %v1728_v49 = vadd.f32 %v2948_v56, %v1727_v48  ;;  %v2376_v50 = vpop.f32.mrb[15].mxu1  ;;  %v1773_v56 = vld [vmem:[%s3285_s7] sm:$0xff] }
0x175f   :  { %v2581_v63 = vpack.c.bf16 %v1774_v61, %v1773_v56 }
0x1760   :  { %2712 = vtanh.f32 %v1728_v49  ;;  %v1918_v51 = vmul.f32 -1.442695, %v1728_v49 }
0x1761   :  { %2582 = vmatpush3.bf16.msra.mxu0 %v2581_v63 }
0x1762   :  { %2714 = vpow2.f32 %v1918_v51  ;;  %2583 = vmatprep.subr.bf16.mxu0 %v2725_v1 }
0x1765   :  { %2585 = vmatpush3.bf16.msra.mxu0 %v2584_v2 }
0x176a   :  { %v2713_v19 = vpop.eup %2712 }
0x176b   :  { %1740 = vrot.lane.b32.xlu1 %v2713_v19, %s2729_s22 }
0x176c   :  { %v2715_v52 = vpop.eup %2714 }
0x176d   :  { %v1734_v53 = vadd.f32 1.0, %v2715_v52 }
0x176f   :  { %2716 = vrcp.f32 %v1734_v53 }
0x1779   :  { %v2717_v54 = vpop.eup %2716 }
0x177a   :  { %v1738_v58 = vmul.f32 %v2717_v54, %v1539_v35 }
0x17dd   :  { %v1741_v55 = vpop.permute.xlu1 %1740 }
0x17de   :  { %v1743_v57 = vmul.f32 %v2717_v54, %v1741_v55 }
0x17e0   :  { %1745 = vrot.lane.b32.xlu0 %v1743_v57, %s2728_s23 }
0x1852   :  { %v1746_v59 = vpop.permute.xlu0 %1745 }
0x1853   :  { %v1748_v60 = vadd.f32 %v1746_v59, %v1738_v58 }
0x1855   :  { %2718 = vtanh.f32 %v1748_v60 }
0x185f   :  { %v2719_v3 = vpop.eup %2718 }
0x1860   :  { %1751 = vrot.lane.b32.xlu1 %v2719_v3, %s2729_s22 }
0x1864   :  { %1757 = vrot.lane.b32.xlu1 %v1642_v8, %s2730_s2 }
0x18d2   :  { %v1752_v7 = vpop.permute.xlu1 %1751 }
0x18d3   :  { %v1754_v9 = vmul.f32 %v2717_v54, %v1752_v7 }
0x18d5   :  { %1762 = vrot.lane.b32.xlu0 %v1754_v9, %s2728_s23 }
0x18d6   :  { %v1758_v10 = vpop.permute.xlu1 %1757 }
0x18d7   :  { %1760 = vst.msk [vmem:[%s3287_s11] sm:$0xff] %vm66_vm1, %v1758_v10 }
0x18d9   :  { %1768 = vrot.lane.b32.xlu0 %v1748_v60, %s2730_s2 }
0x1947   :  { %v1763_v1 = vpop.permute.xlu0 %1762 }
0x1948   :  { %1919 = vst.msk [vmem:[%s3284_s10 + $0x8] sm:$0xff] %vm66_vm1, %v1763_v1  ;;  %2386 = vmatmul.mubr.msk.f32.vlgmr.msra.gmra.mrb[16].mxu0 %vm66_vm1, %v1763_v1 }
0x194b   :  { %v1769_v11 = vpop.permute.xlu0 %1768 }
0x194c   :  { %1920 = vst.msk [vmem:[%s3287_s11 + $0x8] sm:$0xff] %vm66_vm1, %v1769_v11 }
0x1a1b   :  { %v1852_v14 = vpop.f32.mrb[16].mxu0 }
0x1a1c   :  { %v1853_v37 = vadd.f32 %v1921_v13, %v1852_v14  ;;  %v2387_v16 = vpop.f32.mrb[17].mxu0 }
0x1a1e   :  { %v1923_v17 = vmul.f32 -1.442695, %v1853_v37 }
0x1a20   :  { %2720 = vpow2.f32 %v1923_v17 }
0x1a2a   :  { %v2721_v18 = vpop.eup %2720 }
0x1a2b   :  { %v1859_v39 = vadd.f32 1.0, %v2721_v18 }
0x1a2d   :  { %2722 = vrcp.f32 %v1859_v39 }
0x1a37   :  { %v2723_v20 = vpop.eup %2722 }
0x1a38   :  { %1863 = vst.msk [vmem:[%s3288_s9] sm:$0xff] %vm1862_vm3, %v2723_v20 }

</bundles_post_ra>
